<compile_context>
chip_gen: v7x
topology: tpu7x:2x2x1
jax: 0.10.0
libtpu: 0.0.40
codegen_flags: <defaults>
</compile_context>

<pallas_src>
import functools

import jax
import jax.numpy as jnp
from jax import lax
from jax.experimental import pallas as pl
from jax.experimental.pallas import tpu as pltpu


def _round_up(x, m):
    return (x + m - 1) // m * m


# ---------------------------------------------------------------------------
# Pallas kernels
# ---------------------------------------------------------------------------

def _make_conv_stats_kernel(kd, kh, kw, Wp, rows, cin):
    """Implicit-GEMM conv for one (b, d_out) output frame + BN partial stats.

    refs: [x_0..x_{kd-1}, w, mask, y, s, ss]
      x_a  : (L, Cin)     bf16  padded depth slice d_out*sd + a, spatial flattened
      w    : (K, Cpad)    bf16  weight, K ordered (kd, kh, kw, Cin)
      mask : (rows, 1)    f32   1.0 on rows that map to a valid output position
      y    : (rows, Cpad) bf16  full-width conv output (incl. garbage rows)
      s,ss : (1, Cpad)    f32   per-frame masked sum / sum-of-squares
    """

    def kernel(*refs):
        x_refs = refs[:kd]
        w_ref, mask_ref = refs[kd], refs[kd + 1]
        y_ref, s_ref, ss_ref = refs[kd + 2], refs[kd + 3], refs[kd + 4]

        # In-VMEM im2col: each tap is a contiguous, statically-shifted
        # row-window of the flattened (Hp*Wp, Cin) frame.
        slabs = []
        for a in range(kd):
            frame = x_refs[a][...]                       # (L, Cin) bf16
            for bb in range(kh):
                for c in range(kw):
                    start = bb * Wp + c
                    slabs.append(frame[start:start + rows, :])
        patches = jnp.concatenate(slabs, axis=1)         # (rows, K) bf16

        # Single MXU GEMM per frame, f32 accumulation.
        y = jnp.dot(patches, w_ref[...],
                    preferred_element_type=jnp.float32)  # (rows, Cpad) f32
        y_ref[...] = y.astype(y_ref.dtype)               # bf16 intermediate

        # Per-frame BN partial statistics over valid rows only.
        m = mask_ref[...]                                # (rows, 1) f32
        ym = y * m
        s_ref[...] = jnp.sum(ym, axis=0, keepdims=True)
        ss_ref[...] = jnp.sum(ym * y, axis=0, keepdims=True)

    return kernel


def _bn_relu_kernel(y_ref, scale_ref, shift_ref, o_ref):
    """Fused BatchNorm affine (precomputed scale/shift) + ReLU."""
    y = y_ref[...].astype(jnp.float32)
    o_ref[...] = jnp.maximum(y * scale_ref[...] + shift_ref[...], 0.0)


# ---------------------------------------------------------------------------
# Wrapper
# ---------------------------------------------------------------------------

def conv3d_bn_relu(x, w, b, gamma, beta, *, stride, padding, eps=1e-5,
                   vmem_limit_bytes=None):
    """Pallas implementation of the Conv3D module forward pass.

    x:      (B, T, C_in, H, W)          float32
    w:      (C_out, C_in, kd, kh, kw)   conv3d weight (PyTorch OIDHW layout)
    b:      (C_out,)                    conv3d bias (unused: cancelled by BN)
    gamma:  (C_out,) BatchNorm3d weight
    beta:   (C_out,) BatchNorm3d bias
    Returns (B, T_out, C_out, H_out, W_out)  float32.
    """
    B, T, Cin, H, W = x.shape
    Cout = w.shape[0]
    kd, kh, kw = w.shape[2:]
    sd, sh, sw = stride
    pd, ph, pw = padding

    Dp, Hp, Wp = T + 2 * pd, H + 2 * ph, W + 2 * pw
    Do = (Dp - kd) // sd + 1
    Ho = (Hp - kh) // sh + 1
    Wo = (Wp - kw) // sw + 1

    # Full-width rows computed per frame: (h', w') in [0, Ho1) x [0, Wp).
    Ho1 = Hp - kh + 1
    rows = Ho1 * Wp
    L = Hp * Wp + (kw - 1)        # flattened frame + tail pad (tap windows in-bounds)
    K = kd * kh * kw * Cin
    Cpad = _round_up(Cout, 128)   # lane-dense output channels

    # --- input: channels-last, padded, spatial-flattened, bf16 ---------------
    xc = jnp.transpose(x, (0, 1, 3, 4, 2))                         # (B,T,H,W,Cin)
    xp = jnp.pad(xc, ((0, 0), (pd, pd), (ph, ph), (pw, pw), (0, 0)))
    xf = xp.reshape(B, Dp, Hp * Wp, Cin)
    xf = jnp.pad(xf, ((0, 0), (0, 0), (0, kw - 1), (0, 0)))
    xf = xf.astype(jnp.bfloat16)                                   # (B,Dp,L,Cin)

    # --- weight: (K, Cpad), K ordered (kd, kh, kw, Cin), bf16 ----------------
    w2 = jnp.transpose(w, (2, 3, 4, 1, 0)).reshape(K, Cout)
    w2 = jnp.pad(w2, ((0, 0), (0, Cpad - Cout))).astype(jnp.bfloat16)

    # Conv bias dropped on purpose: BatchNorm with batch statistics exactly
    # cancels a per-channel additive bias (mean shifts by b, variance unchanged).
    del b

    # --- mask of rows that correspond to a valid output position -------------
    hh = jnp.arange(rows, dtype=jnp.int32) // Wp
    ww = jnp.arange(rows, dtype=jnp.int32) % Wp
    valid = ((hh % sh == 0) & (hh // sh < Ho) &
             (ww % sw == 0) & (ww // sw < Wo))
    mask = valid.astype(jnp.float32).reshape(rows, 1)

    # --- kernel 1: implicit-GEMM conv + per-frame BN partial stats -----------
    x_specs = [
        pl.BlockSpec((None, None, L, Cin),
                     lambda bi, di, a=a: (bi, di * sd + a, 0, 0))
        for a in range(kd)
    ]
    conv_kernel = _make_conv_stats_kernel(kd, kh, kw, Wp, rows, Cin)

    y, s_part, ss_part = pl.pallas_call(
        conv_kernel,
        out_shape=(jax.ShapeDtypeStruct((B, Do, rows, Cpad), jnp.bfloat16),
                   jax.ShapeDtypeStruct((B, Do, 1, Cpad), jnp.float32),
                   jax.ShapeDtypeStruct((B, Do, 1, Cpad), jnp.float32)),
        grid_spec=pltpu.PrefetchScalarGridSpec(
            num_scalar_prefetch=0,
            grid=(B, Do),
            in_specs=x_specs + [
                pl.BlockSpec((K, Cpad), lambda bi, di: (0, 0)),      # resident weight
                pl.BlockSpec((rows, 1), lambda bi, di: (0, 0)),      # resident mask
            ],
            out_specs=[
                pl.BlockSpec((None, None, rows, Cpad), lambda bi, di: (bi, di, 0, 0)),
                pl.BlockSpec((None, None, 1, Cpad), lambda bi, di: (bi, di, 0, 0)),
                pl.BlockSpec((None, None, 1, Cpad), lambda bi, di: (bi, di, 0, 0)),
            ]),
        compiler_params=pltpu.CompilerParams(
            dimension_semantics=("parallel", "parallel"),
            vmem_limit_bytes=vmem_limit_bytes),
    )(*([xf] * kd), w2, mask)

    # --- BN finalize (tiny per-channel glue): training-mode batch statistics -
    Mvalid = B * Do * Ho * Wo
    s_tot = jnp.sum(s_part, axis=(0, 1, 2))                  # (Cpad,)
    ss_tot = jnp.sum(ss_part, axis=(0, 1, 2))
    mean = s_tot / Mvalid
    var = jnp.maximum(ss_tot / Mvalid - mean * mean, 0.0)    # clamp vs. cancellation
    inv_std = lax.rsqrt(var + eps)
    g = jnp.pad(gamma.astype(jnp.float32), (0, Cpad - Cout))
    bt = jnp.pad(beta.astype(jnp.float32), (0, Cpad - Cout))
    scale = (g * inv_std).reshape(1, 1, Cpad)
    shift = (bt - mean * g * inv_std).reshape(1, 1, Cpad)

    # --- kernel 2: fused BN affine + ReLU (large lane-dense blocks) ----------
    F = B * Do
    y2 = y.reshape(F, rows, Cpad)
    fchunk = max(1, min(F, 2048 // max(rows, 1)))   # target ~2048 rows per block
    while F % fchunk:
        fchunk -= 1

    out_full = pl.pallas_call(
        _bn_relu_kernel,
        out_shape=jax.ShapeDtypeStruct((F, rows, Cpad), jnp.float32),
        grid_spec=pltpu.PrefetchScalarGridSpec(
            num_scalar_prefetch=0,
            grid=(F // fchunk,),
            in_specs=[pl.BlockSpec((fchunk, rows, Cpad), lambda i: (i, 0, 0)),
                      pl.BlockSpec((1, 1, Cpad), lambda i: (0, 0, 0)),
                      pl.BlockSpec((1, 1, Cpad), lambda i: (0, 0, 0))],
            out_specs=pl.BlockSpec((fchunk, rows, Cpad), lambda i: (i, 0, 0))),
        compiler_params=pltpu.CompilerParams(
            dimension_semantics=("parallel",),
            vmem_limit_bytes=vmem_limit_bytes),
    )(y2, scale, shift)

    # --- strip full-width garbage, drop channel padding, restore layout ------
    out = out_full.reshape(B, Do, Ho1, Wp, Cpad)
    out = out[:, :, :(Ho - 1) * sh + 1:sh, :(Wo - 1) * sw + 1:sw, :Cout]
    out = jnp.transpose(out, (0, 1, 4, 2, 3))        # (B, Do, Cout, Ho, Wo)
    return out


# ---------------------------------------------------------------------------
# Pure-JAX reference (for in-script verification)
# ---------------------------------------------------------------------------

def _reference(x, w, b, gamma, beta, stride, padding, eps=1e-5):
    xc = jnp.transpose(x, (0, 2, 1, 3, 4))
    pd, ph, pw = padding
    y = lax.conv_general_dilated(
        xc, w, window_strides=stride,
        padding=[(pd, pd), (ph, ph), (pw, pw)],
        dimension_numbers=('NCDHW', 'OIDHW', 'NCDHW'))
    y = y + b.reshape(1, -1, 1, 1, 1)
    mean = y.mean(axis=(0, 2, 3, 4), keepdims=True)
    var = y.var(axis=(0, 2, 3, 4), keepdims=True)   # biased, as BN normalization uses
    yn = (y - mean) / jnp.sqrt(var + eps)
    yn = yn * gamma.reshape(1, -1, 1, 1, 1) + beta.reshape(1, -1, 1, 1, 1)
    yr = jnp.maximum(yn, 0.0)
    return jnp.transpose(yr, (0, 2, 1, 3, 4))


# ---------------------------------------------------------------------------

if __name__ == "__main__":
    key = jax.random.PRNGKey(0)
    B, T, Cin, H, W = 2, 4, 4, 8, 8
    Cout = 8
    ksize = (3, 3, 3)
    stride = (1, 1, 1)
    padding = (1, 1, 1)

    k1, k2, k3, k4, k5 = jax.random.split(key, 5)
    x = jax.random.normal(k1, (B, T, Cin, H, W), jnp.float32)

    # Deterministic synthetic parameters (PyTorch-style uniform fan-in init).
    fan_in = Cin * ksize[0] * ksize[1] * ksize[2]
    bound = 1.0 / (fan_in ** 0.5)
    w = jax.random.uniform(k2, (Cout, Cin) + ksize, jnp.float32, -bound, bound)
    b = jax.random.uniform(k3, (Cout,), jnp.float32, -bound, bound)
    gamma = 1.0 + 0.1 * jax.random.normal(k4, (Cout,), jnp.float32)
    beta = 0.1 * jax.random.normal(k5, (Cout,), jnp.float32)

    fwd = jax.jit(functools.partial(conv3d_bn_relu, stride=stride, padding=padding))
    out = fwd(x, w, b, gamma, beta)
    out = jax.block_until_ready(out)

    ref = _reference(x, w, b, gamma, beta, stride, padding)
    assert out.shape == ref.shape, (out.shape, ref.shape)
    max_err = float(jnp.max(jnp.abs(out - ref)))
    # bf16 GEMM inputs + bf16 conv intermediate (f32 accumulation/stats) =>
    # compare against the f32 reference at bf16-level tolerance.
    assert jnp.allclose(out, ref, atol=5e-2, rtol=5e-2), max_err

    print("KERNEL_OK")
</pallas_src>

<mosaic_0001>
module attributes {stable_mosaic.version = 11 : i64} {
  func.func @kernel(%arg0: i32, %arg1: i32, %arg2: memref<1x1x102x4xbf16, #tpu.memory_space<vmem>>, %arg3: memref<1x1x102x4xbf16, #tpu.memory_space<vmem>>, %arg4: memref<1x1x102x4xbf16, #tpu.memory_space<vmem>>, %arg5: memref<108x128xbf16, #tpu.memory_space<vmem>>, %arg6: memref<80x1xf32, #tpu.memory_space<vmem>>, %arg7: memref<1x1x80x128xbf16, #tpu.memory_space<vmem>>, %arg8: memref<1x1x1x128xf32, #tpu.memory_space<vmem>>, %arg9: memref<1x1x1x128xf32, #tpu.memory_space<vmem>>) attributes {dimension_semantics = [#tpu.dimension_semantics<parallel>, #tpu.dimension_semantics<parallel>], iteration_bounds = array<i64: 2, 4>, scalar_prefetch = 0 : i64, scratch_operands = 0 : i64, tpu.core_type = #tpu.core_type<tc>, window_params = [{transform_indices = @transform_0, window_bounds = array<i64: 1, 1, 102, 4>}, {transform_indices = @transform_1, window_bounds = array<i64: 1, 1, 102, 4>}, {transform_indices = @transform_2, window_bounds = array<i64: 1, 1, 102, 4>}, {pipeline_mode = #tpu.pipeline_mode<synchronous>, transform_indices = @transform_3, window_bounds = array<i64: 108, 128>}, {pipeline_mode = #tpu.pipeline_mode<synchronous>, transform_indices = @transform_4, window_bounds = array<i64: 80, 1>}, {transform_indices = @transform_5, window_bounds = array<i64: 1, 1, 80, 128>}, {transform_indices = @transform_6, window_bounds = array<i64: 1, 1, 1, 128>}, {transform_indices = @transform_7, window_bounds = array<i64: 1, 1, 1, 128>}]} {
    %c0 = arith.constant 0 : index
    %c0_0 = arith.constant 0 : index
    %c0_1 = arith.constant 0 : index
    %c0_2 = arith.constant 0 : index
    %0 = vector.load %arg2[%c0, %c0_0, %c0_1, %c0_2] : memref<1x1x102x4xbf16, #tpu.memory_space<vmem>>, vector<1x1x102x4xbf16>
    %1 = vector.shape_cast %0 : vector<1x1x102x4xbf16> to vector<102x4xbf16>
    %2 = vector.extract_strided_slice %1 {offsets = [0, 0], sizes = [80, 4], strides = [1, 1]} : vector<102x4xbf16> to vector<80x4xbf16>
    %3 = vector.extract_strided_slice %1 {offsets = [1, 0], sizes = [80, 4], strides = [1, 1]} : vector<102x4xbf16> to vector<80x4xbf16>
    %4 = vector.extract_strided_slice %1 {offsets = [2, 0], sizes = [80, 4], strides = [1, 1]} : vector<102x4xbf16> to vector<80x4xbf16>
    %5 = vector.extract_strided_slice %1 {offsets = [10, 0], sizes = [80, 4], strides = [1, 1]} : vector<102x4xbf16> to vector<80x4xbf16>
    %6 = vector.extract_strided_slice %1 {offsets = [11, 0], sizes = [80, 4], strides = [1, 1]} : vector<102x4xbf16> to vector<80x4xbf16>
    %7 = vector.extract_strided_slice %1 {offsets = [12, 0], sizes = [80, 4], strides = [1, 1]} : vector<102x4xbf16> to vector<80x4xbf16>
    %8 = vector.extract_strided_slice %1 {offsets = [20, 0], sizes = [80, 4], strides = [1, 1]} : vector<102x4xbf16> to vector<80x4xbf16>
    %9 = vector.extract_strided_slice %1 {offsets = [21, 0], sizes = [80, 4], strides = [1, 1]} : vector<102x4xbf16> to vector<80x4xbf16>
    %10 = vector.extract_strided_slice %1 {offsets = [22, 0], sizes = [80, 4], strides = [1, 1]} : vector<102x4xbf16> to vector<80x4xbf16>
    %c0_3 = arith.constant 0 : index
    %c0_4 = arith.constant 0 : index
    %c0_5 = arith.constant 0 : index
    %c0_6 = arith.constant 0 : index
    %11 = vector.load %arg3[%c0_3, %c0_4, %c0_5, %c0_6] : memref<1x1x102x4xbf16, #tpu.memory_space<vmem>>, vector<1x1x102x4xbf16>
    %12 = vector.shape_cast %11 : vector<1x1x102x4xbf16> to vector<102x4xbf16>
    %13 = vector.extract_strided_slice %12 {offsets = [0, 0], sizes = [80, 4], strides = [1, 1]} : vector<102x4xbf16> to vector<80x4xbf16>
    %14 = vector.extract_strided_slice %12 {offsets = [1, 0], sizes = [80, 4], strides = [1, 1]} : vector<102x4xbf16> to vector<80x4xbf16>
    %15 = vector.extract_strided_slice %12 {offsets = [2, 0], sizes = [80, 4], strides = [1, 1]} : vector<102x4xbf16> to vector<80x4xbf16>
    %16 = vector.extract_strided_slice %12 {offsets = [10, 0], sizes = [80, 4], strides = [1, 1]} : vector<102x4xbf16> to vector<80x4xbf16>
    %17 = vector.extract_strided_slice %12 {offsets = [11, 0], sizes = [80, 4], strides = [1, 1]} : vector<102x4xbf16> to vector<80x4xbf16>
    %18 = vector.extract_strided_slice %12 {offsets = [12, 0], sizes = [80, 4], strides = [1, 1]} : vector<102x4xbf16> to vector<80x4xbf16>
    %19 = vector.extract_strided_slice %12 {offsets = [20, 0], sizes = [80, 4], strides = [1, 1]} : vector<102x4xbf16> to vector<80x4xbf16>
    %20 = vector.extract_strided_slice %12 {offsets = [21, 0], sizes = [80, 4], strides = [1, 1]} : vector<102x4xbf16> to vector<80x4xbf16>
    %21 = vector.extract_strided_slice %12 {offsets = [22, 0], sizes = [80, 4], strides = [1, 1]} : vector<102x4xbf16> to vector<80x4xbf16>
    %c0_7 = arith.constant 0 : index
    %c0_8 = arith.constant 0 : index
    %c0_9 = arith.constant 0 : index
    %c0_10 = arith.constant 0 : index
    %22 = vector.load %arg4[%c0_7, %c0_8, %c0_9, %c0_10] : memref<1x1x102x4xbf16, #tpu.memory_space<vmem>>, vector<1x1x102x4xbf16>
    %23 = vector.shape_cast %22 : vector<1x1x102x4xbf16> to vector<102x4xbf16>
    %24 = vector.extract_strided_slice %23 {offsets = [0, 0], sizes = [80, 4], strides = [1, 1]} : vector<102x4xbf16> to vector<80x4xbf16>
    %25 = vector.extract_strided_slice %23 {offsets = [1, 0], sizes = [80, 4], strides = [1, 1]} : vector<102x4xbf16> to vector<80x4xbf16>
    %26 = vector.extract_strided_slice %23 {offsets = [2, 0], sizes = [80, 4], strides = [1, 1]} : vector<102x4xbf16> to vector<80x4xbf16>
    %27 = vector.extract_strided_slice %23 {offsets = [10, 0], sizes = [80, 4], strides = [1, 1]} : vector<102x4xbf16> to vector<80x4xbf16>
    %28 = vector.extract_strided_slice %23 {offsets = [11, 0], sizes = [80, 4], strides = [1, 1]} : vector<102x4xbf16> to vector<80x4xbf16>
    %29 = vector.extract_strided_slice %23 {offsets = [12, 0], sizes = [80, 4], strides = [1, 1]} : vector<102x4xbf16> to vector<80x4xbf16>
    %30 = vector.extract_strided_slice %23 {offsets = [20, 0], sizes = [80, 4], strides = [1, 1]} : vector<102x4xbf16> to vector<80x4xbf16>
    %31 = vector.extract_strided_slice %23 {offsets = [21, 0], sizes = [80, 4], strides = [1, 1]} : vector<102x4xbf16> to vector<80x4xbf16>
    %32 = vector.extract_strided_slice %23 {offsets = [22, 0], sizes = [80, 4], strides = [1, 1]} : vector<102x4xbf16> to vector<80x4xbf16>
    %33 = tpu.concatenate %2, %3, %4, %5, %6, %7, %8, %9, %10, %13, %14, %15, %16, %17, %18, %19 in 1 : vector<80x4xbf16>, vector<80x4xbf16>, vector<80x4xbf16>, vector<80x4xbf16>, vector<80x4xbf16>, vector<80x4xbf16>, vector<80x4xbf16>, vector<80x4xbf16>, vector<80x4xbf16>, vector<80x4xbf16>, vector<80x4xbf16>, vector<80x4xbf16>, vector<80x4xbf16>, vector<80x4xbf16>, vector<80x4xbf16>, vector<80x4xbf16> -> vector<80x64xbf16>
    %34 = tpu.concatenate %20, %21, %24, %25, %26, %27, %28, %29, %30, %31, %32 in 1 : vector<80x4xbf16>, vector<80x4xbf16>, vector<80x4xbf16>, vector<80x4xbf16>, vector<80x4xbf16>, vector<80x4xbf16>, vector<80x4xbf16>, vector<80x4xbf16>, vector<80x4xbf16>, vector<80x4xbf16>, vector<80x4xbf16> -> vector<80x44xbf16>
    %35 = tpu.concatenate %33, %34 in 1 : vector<80x64xbf16>, vector<80x44xbf16> -> vector<80x108xbf16>
    %c0_11 = arith.constant 0 : index
    %c0_12 = arith.constant 0 : index
    %36 = vector.load %arg5[%c0_11, %c0_12] : memref<108x128xbf16, #tpu.memory_space<vmem>>, vector<108x128xbf16>
    %cst = arith.constant dense<0.000000e+00> : vector<80x128xf32>
    %37 = tpu.matmul %35, %36, %cst {dimension_numbers = #tpu.dot_dimension_numbers<[1], [0], [0], [1], [0, 0, 1, 1], [], []>} : vector<80x108xbf16>, vector<108x128xbf16>, vector<80x128xf32> -> vector<80x128xf32>
    %38 = arith.truncf %37 : vector<80x128xf32> to vector<80x128xbf16>
    %c0_13 = arith.constant 0 : index
    %c0_14 = arith.constant 0 : index
    %c0_15 = arith.constant 0 : index
    %c0_16 = arith.constant 0 : index
    %39 = vector.load %arg7[%c0_13, %c0_14, %c0_15, %c0_16] : memref<1x1x80x128xbf16, #tpu.memory_space<vmem>>, vector<1x1x80x128xbf16>
    %40 = vector.shape_cast %39 : vector<1x1x80x128xbf16> to vector<80x128xbf16>
    %41 = vector.shape_cast %38 : vector<80x128xbf16> to vector<1x1x80x128xbf16>
    tpu.vector_store %arg7[%c0_13, %c0_14, %c0_15, %c0_16], %41 {strides = array<i32>} : memref<1x1x80x128xbf16, #tpu.memory_space<vmem>>, vector<1x1x80x128xbf16>,
    %c0_17 = arith.constant 0 : index
    %c0_18 = arith.constant 0 : index
    %42 = vector.load %arg6[%c0_17, %c0_18] : memref<80x1xf32, #tpu.memory_space<vmem>>, vector<80x1xf32>
    %43 = vector.broadcast %42 : vector<80x1xf32> to vector<80x128xf32>
    %44 = arith.mulf %37, %43 : vector<80x128xf32>
    %cst_19 = arith.constant dense<0.000000e+00> : vector<128xf32>
    %45 = vector.multi_reduction <add>, %44, %cst_19 [0] : vector<80x128xf32> to vector<128xf32>
    %46 = vector.shape_cast %45 : vector<128xf32> to vector<1x128xf32>
    %c0_20 = arith.constant 0 : index
    %c0_21 = arith.constant 0 : index
    %c0_22 = arith.constant 0 : index
    %c0_23 = arith.constant 0 : index
    %47 = vector.load %arg8[%c0_20, %c0_21, %c0_22, %c0_23] : memref<1x1x1x128xf32, #tpu.memory_space<vmem>>, vector<1x1x1x128xf32>
    %48 = vector.shape_cast %47 : vector<1x1x1x128xf32> to vector<1x128xf32>
    %49 = vector.shape_cast %46 : vector<1x128xf32> to vector<1x1x1x128xf32>
    tpu.vector_store %arg8[%c0_20, %c0_21, %c0_22, %c0_23], %49 {strides = array<i32>} : memref<1x1x1x128xf32, #tpu.memory_space<vmem>>, vector<1x1x1x128xf32>,
    %50 = arith.mulf %44, %37 : vector<80x128xf32>
    %cst_24 = arith.constant dense<0.000000e+00> : vector<128xf32>
    %51 = vector.multi_reduction <add>, %50, %cst_24 [0] : vector<80x128xf32> to vector<128xf32>
    %52 = vector.shape_cast %51 : vector<128xf32> to vector<1x128xf32>
    %c0_25 = arith.constant 0 : index
    %c0_26 = arith.constant 0 : index
    %c0_27 = arith.constant 0 : index
    %c0_28 = arith.constant 0 : index
    %53 = vector.load %arg9[%c0_25, %c0_26, %c0_27, %c0_28] : memref<1x1x1x128xf32, #tpu.memory_space<vmem>>, vector<1x1x1x128xf32>
    %54 = vector.shape_cast %53 : vector<1x1x1x128xf32> to vector<1x128xf32>
    %55 = vector.shape_cast %52 : vector<1x128xf32> to vector<1x1x1x128xf32>
    tpu.vector_store %arg9[%c0_25, %c0_26, %c0_27, %c0_28], %55 {strides = array<i32>} : memref<1x1x1x128xf32, #tpu.memory_space<vmem>>, vector<1x1x1x128xf32>,
    return
  }
  func.func @transform_0(%arg0: i32, %arg1: i32) -> (i32, i32, i32, i32) {
    %c1_i32 = arith.constant 1 : i32
    %0 = arith.muli %arg1, %c1_i32 : i32
    %c0_i32 = arith.constant 0 : i32
    %1 = arith.addi %0, %c0_i32 : i32
    %c0_i32_0 = arith.constant 0 : i32
    %c0_i32_1 = arith.constant 0 : i32
    %c0_i32_2 = arith.constant 0 : i32
    return %arg0, %1, %c0_i32_0, %c0_i32_1 : i32, i32, i32, i32
  }
  func.func @transform_1(%arg0: i32, %arg1: i32) -> (i32, i32, i32, i32) {
    %c1_i32 = arith.constant 1 : i32
    %0 = arith.muli %arg1, %c1_i32 : i32
    %c1_i32_0 = arith.constant 1 : i32
    %1 = arith.addi %0, %c1_i32_0 : i32
    %c0_i32 = arith.constant 0 : i32
    %c0_i32_1 = arith.constant 0 : i32
    %c0_i32_2 = arith.constant 0 : i32
    return %arg0, %1, %c0_i32, %c0_i32_1 : i32, i32, i32, i32
  }
  func.func @transform_2(%arg0: i32, %arg1: i32) -> (i32, i32, i32, i32) {
    %c1_i32 = arith.constant 1 : i32
    %0 = arith.muli %arg1, %c1_i32 : i32
    %c2_i32 = arith.constant 2 : i32
    %1 = arith.addi %0, %c2_i32 : i32
    %c0_i32 = arith.constant 0 : i32
    %c0_i32_0 = arith.constant 0 : i32
    %c0_i32_1 = arith.constant 0 : i32
    return %arg0, %1, %c0_i32, %c0_i32_0 : i32, i32, i32, i32
  }
  func.func @transform_3(%arg0: i32, %arg1: i32) -> (i32, i32) {
    %c0_i32 = arith.constant 0 : i32
    %c0_i32_0 = arith.constant 0 : i32
    %c0_i32_1 = arith.constant 0 : i32
    return %c0_i32, %c0_i32_0 : i32, i32
  }
  func.func @transform_4(%arg0: i32, %arg1: i32) -> (i32, i32) {
    %c0_i32 = arith.constant 0 : i32
    %c0_i32_0 = arith.constant 0 : i32
    %c0_i32_1 = arith.constant 0 : i32
    return %c0_i32, %c0_i32_0 : i32, i32
  }
  func.func @transform_5(%arg0: i32, %arg1: i32) -> (i32, i32, i32, i32) {
    %c0_i32 = arith.constant 0 : i32
    %c0_i32_0 = arith.constant 0 : i32
    %c0_i32_1 = arith.constant 0 : i32
    return %arg0, %arg1, %c0_i32, %c0_i32_0 : i32, i32, i32, i32
  }
  func.func @transform_6(%arg0: i32, %arg1: i32) -> (i32, i32, i32, i32) {
    %c0_i32 = arith.constant 0 : i32
    %c0_i32_0 = arith.constant 0 : i32
    %c0_i32_1 = arith.constant 0 : i32
    return %arg0, %arg1, %c0_i32, %c0_i32_0 : i32, i32, i32, i32
  }
  func.func @transform_7(%arg0: i32, %arg1: i32) -> (i32, i32, i32, i32) {
    %c0_i32 = arith.constant 0 : i32
    %c0_i32_0 = arith.constant 0 : i32
    %c0_i32_1 = arith.constant 0 : i32
    return %arg0, %arg1, %c0_i32, %c0_i32_0 : i32, i32, i32, i32
  }
}

module attributes {stable_mosaic.version = 11 : i64} {
  func.func @_bn_relu_kernel(%arg0: i32, %arg1: memref<8x80x128xbf16, #tpu.memory_space<vmem>>, %arg2: memref<1x1x128xf32, #tpu.memory_space<vmem>>, %arg3: memref<1x1x128xf32, #tpu.memory_space<vmem>>, %arg4: memref<8x80x128xf32, #tpu.memory_space<vmem>>) attributes {dimension_semantics = [#tpu.dimension_semantics<parallel>], iteration_bounds = array<i64: 1>, scalar_prefetch = 0 : i64, scratch_operands = 0 : i64, tpu.core_type = #tpu.core_type<tc>, window_params = [{transform_indices = @transform_0, window_bounds = array<i64: 8, 80, 128>}, {pipeline_mode = #tpu.pipeline_mode<synchronous>, transform_indices = @transform_1, window_bounds = array<i64: 1, 1, 128>}, {pipeline_mode = #tpu.pipeline_mode<synchronous>, transform_indices = @transform_2, window_bounds = array<i64: 1, 1, 128>}, {transform_indices = @transform_3, window_bounds = array<i64: 8, 80, 128>}]} {
    %c0 = arith.constant 0 : index
    %c0_0 = arith.constant 0 : index
    %c0_1 = arith.constant 0 : index
    %0 = vector.load %arg1[%c0, %c0_0, %c0_1] : memref<8x80x128xbf16, #tpu.memory_space<vmem>>, vector<8x80x128xbf16>
    %1 = arith.extf %0 : vector<8x80x128xbf16> to vector<8x80x128xf32>
    %c0_2 = arith.constant 0 : index
    %c0_3 = arith.constant 0 : index
    %c0_4 = arith.constant 0 : index
    %2 = vector.load %arg2[%c0_2, %c0_3, %c0_4] : memref<1x1x128xf32, #tpu.memory_space<vmem>>, vector<1x1x128xf32>
    %3 = vector.broadcast %2 : vector<1x1x128xf32> to vector<8x80x128xf32>
    %4 = arith.mulf %1, %3 : vector<8x80x128xf32>
    %c0_5 = arith.constant 0 : index
    %c0_6 = arith.constant 0 : index
    %c0_7 = arith.constant 0 : index
    %5 = vector.load %arg3[%c0_5, %c0_6, %c0_7] : memref<1x1x128xf32, #tpu.memory_space<vmem>>, vector<1x1x128xf32>
    %6 = vector.broadcast %5 : vector<1x1x128xf32> to vector<8x80x128xf32>
    %7 = arith.addf %4, %6 : vector<8x80x128xf32>
    %cst = arith.constant 0.000000e+00 : f32
    %8 = vector.broadcast %cst : f32 to vector<8x80x128xf32>
    %9 = arith.maximumf %7, %8 : vector<8x80x128xf32>
    %c0_8 = arith.constant 0 : index
    %c0_9 = arith.constant 0 : index
    %c0_10 = arith.constant 0 : index
    %10 = vector.load %arg4[%c0_8, %c0_9, %c0_10] : memref<8x80x128xf32, #tpu.memory_space<vmem>>, vector<8x80x128xf32>
    tpu.vector_store %arg4[%c0_8, %c0_9, %c0_10], %9 {strides = array<i32>} : memref<8x80x128xf32, #tpu.memory_space<vmem>>, vector<8x80x128xf32>,
    return
  }
  func.func @transform_0(%arg0: i32) -> (i32, i32, i32) {
    %c0_i32 = arith.constant 0 : i32
    %c0_i32_0 = arith.constant 0 : i32
    %c0_i32_1 = arith.constant 0 : i32
    return %arg0, %c0_i32, %c0_i32_0 : i32, i32, i32
  }
  func.func @transform_1(%arg0: i32) -> (i32, i32, i32) {
    %c0_i32 = arith.constant 0 : i32
    %c0_i32_0 = arith.constant 0 : i32
    %c0_i32_1 = arith.constant 0 : i32
    %c0_i32_2 = arith.constant 0 : i32
    return %c0_i32, %c0_i32_0, %c0_i32_1 : i32, i32, i32
  }
  func.func @transform_2(%arg0: i32) -> (i32, i32, i32) {
    %c0_i32 = arith.constant 0 : i32
    %c0_i32_0 = arith.constant 0 : i32
    %c0_i32_1 = arith.constant 0 : i32
    %c0_i32_2 = arith.constant 0 : i32
    return %c0_i32, %c0_i32_0, %c0_i32_1 : i32, i32, i32
  }
  func.func @transform_3(%arg0: i32) -> (i32, i32, i32) {
    %c0_i32 = arith.constant 0 : i32
    %c0_i32_0 = arith.constant 0 : i32
    %c0_i32_1 = arith.constant 0 : i32
    return %arg0, %c0_i32, %c0_i32_0 : i32, i32, i32
  }
}

</mosaic_0001>

<bundles_post_ra>
// kernel: conv3d_bn_relu.3
= control target key start
LH: loop header
LB: loop body
LE: loop exit
PB: predicated region body
PF: predicated region fallthrough
CT: control target
= control target key end

     0   :  { %s1263_s0 = inlined_call_operand.vmem [shape: bf16[8,80,128], index: 0, kind: input, shape index: {}]   ;;  %s1264_s1 = inlined_call_operand.vmem [shape: f32[1,1,128], index: 1, kind: input, shape index: {}]   ;;  %s1265_s2 = inlined_call_operand.vmem [shape: f32[1,1,128], index: 2, kind: input, shape index: {}]   ;;  %s1266_s3 = inlined_call_operand.vmem [shape: f32[8,80,128], index: 3, kind: output, shape index: {}]  }
   0x1   :  { %v515_v0 = vld [vmem:[%s1263_s0] sm:$0xff]   ;;  %v674_v4 = vld [vmem:[%s1263_s0 + $0x8] sm:$0xff]   ;;  %v675_v5 = vld [vmem:[%s1263_s0 + $0x10] sm:$0xff]  }
   0x2   :  { %v739_v1 = vld [vmem:[%s1264_s1] ss:$0 sm:$0xff]  ;;  %v516_v2 = vunpack.c.l.bf16 %v515_v0  ;;  %v517_v3 = vunpack.c.h.bf16 %v515_v0  ;;  %v676_v6 = vld [vmem:[%s1263_s0 + $0x18] sm:$0xff]   ;;  %v520_v8 = vunpack.c.l.bf16 %v674_v4  ;;  %v521_v9 = vunpack.c.h.bf16 %v674_v4  ;;  %v678_v33 = vld [vmem:[%s1263_s0 + $0x28] sm:$0xff]  }
   0x3   :  { %v753_v7 = vld [vmem:[%s1265_s2] ss:$0 sm:$0xff]  ;;  %v524_v10 = vunpack.c.l.bf16 %v675_v5  ;;  %v525_v11 = vunpack.c.h.bf16 %v675_v5  ;;  %v528_v14 = vunpack.c.l.bf16 %v676_v6  ;;  %v529_v15 = vunpack.c.h.bf16 %v676_v6  ;;  %v679_v34 = vld [vmem:[%s1263_s0 + $0x30] sm:$0xff]   ;;  %v680_v39 = vld [vmem:[%s1263_s0 + $0x38] sm:$0xff]  }
   0x4   :  { %v181_v12 = vmul.f32 %v516_v2, %v739_v1  ;;  %v182_v13 = vmul.f32 %v517_v3, %v739_v1  ;;  %v183_v16 = vmul.f32 %v520_v8, %v739_v1  ;;  %v184_v17 = vmul.f32 %v521_v9, %v739_v1  ;;  %v677_v28 = vld [vmem:[%s1263_s0 + $0x20] sm:$0xff]   ;;  %v682_v6 = vld [vmem:[%s1263_s0 + $0x48] sm:$0xff]   ;;  %v683_v8 = vld [vmem:[%s1263_s0 + $0x50] sm:$0xff]  }
   0x5   :  { %v185_v18 = vmul.f32 %v524_v10, %v739_v1  ;;  %v186_v19 = vmul.f32 %v525_v11, %v739_v1  ;;  %v187_v22 = vmul.f32 %v528_v14, %v739_v1  ;;  %v188_v23 = vmul.f32 %v529_v15, %v739_v1  ;;  %v681_v0 = vld [vmem:[%s1263_s0 + $0x40] sm:$0xff]  }
   0x6   :  { %v268_v20 = vadd.f32 %v753_v7, %v181_v12  ;;  %v269_v21 = vadd.f32 %v753_v7, %v182_v13  ;;  %v270_v24 = vadd.f32 %v753_v7, %v183_v16  ;;  %v271_v25 = vadd.f32 %v753_v7, %v184_v17  ;;  %v684_v13 = vld [vmem:[%s1263_s0 + $0x58] sm:$0xff]  }
   0x7   :  { %v272_v26 = vadd.f32 %v753_v7, %v185_v18  ;;  %v273_v27 = vadd.f32 %v753_v7, %v186_v19  ;;  %v274_v31 = vadd.f32 %v753_v7, %v187_v22  ;;  %v275_v32 = vadd.f32 %v753_v7, %v188_v23 }
   0x8   :  { %v348_v29 = vmax.f32 %v268_v20, 0.0  ;;  %v349_v30 = vmax.f32 %v269_v21, 0.0  ;;  %v350_v35 = vmax.f32 %v270_v24, 0.0  ;;  %v351_v36 = vmax.f32 %v271_v25, 0.0 }
   0x9   :  { %v352_v37 = vmax.f32 %v272_v26, 0.0  ;;  %v353_v38 = vmax.f32 %v273_v27, 0.0  ;;  %v354_v40 = vmax.f32 %v274_v31, 0.0  ;;  %v355_v41 = vmax.f32 %v275_v32, 0.0 }
   0xa   :  { %428 = vst [vmem:[%s1266_s3] sm:$0xff] %v348_v29  ;;  %429 = vst [vmem:[%s1266_s3 + $0x8] sm:$0xff] %v349_v30  ;;  %v532_v42 = vunpack.c.l.bf16 %v677_v28  ;;  %v533_v43 = vunpack.c.h.bf16 %v677_v28  ;;  %v536_v44 = vunpack.c.l.bf16 %v678_v33  ;;  %v537_v45 = vunpack.c.h.bf16 %v678_v33 }
   0xb   :  { %430 = vst [vmem:[%s1266_s3 + $0x10] sm:$0xff] %v350_v35  ;;  %431 = vst [vmem:[%s1266_s3 + $0x18] sm:$0xff] %v351_v36  ;;  %v540_v46 = vunpack.c.l.bf16 %v679_v34  ;;  %v541_v47 = vunpack.c.h.bf16 %v679_v34  ;;  %v544_v50 = vunpack.c.l.bf16 %v680_v39  ;;  %v545_v51 = vunpack.c.h.bf16 %v680_v39 }
   0xc   :  { %432 = vst [vmem:[%s1266_s3 + $0x20] sm:$0xff] %v352_v37  ;;  %433 = vst [vmem:[%s1266_s3 + $0x28] sm:$0xff] %v353_v38  ;;  %v189_v48 = vmul.f32 %v532_v42, %v739_v1  ;;  %v190_v49 = vmul.f32 %v533_v43, %v739_v1  ;;  %v191_v52 = vmul.f32 %v536_v44, %v739_v1  ;;  %v548_v16 = vunpack.c.l.bf16 %v681_v0  ;;  %v685_v38 = vld [vmem:[%s1263_s0 + $0x60] sm:$0xff]   ;;  %v686_v43 = vld [vmem:[%s1263_s0 + $0x68] sm:$0xff]  }
   0xd   :  { %434 = vst [vmem:[%s1266_s3 + $0x30] sm:$0xff] %v354_v40  ;;  %435 = vst [vmem:[%s1266_s3 + $0x38] sm:$0xff] %v355_v41  ;;  %v192_v53 = vmul.f32 %v537_v45, %v739_v1  ;;  %v193_v54 = vmul.f32 %v540_v46, %v739_v1  ;;  %v194_v55 = vmul.f32 %v541_v47, %v739_v1  ;;  %v549_v17 = vunpack.c.h.bf16 %v681_v0  ;;  %v687_v44 = vld [vmem:[%s1263_s0 + $0x70] sm:$0xff]  }
   0xe   :  { %v276_v56 = vadd.f32 %v753_v7, %v189_v48  ;;  %v277_v57 = vadd.f32 %v753_v7, %v190_v49  ;;  %v195_v58 = vmul.f32 %v544_v50, %v739_v1  ;;  %v196_v59 = vmul.f32 %v545_v51, %v739_v1  ;;  %v688_v49 = vld [vmem:[%s1263_s0 + $0x78] sm:$0xff]  }
   0xf   :  { %v278_v60 = vadd.f32 %v753_v7, %v191_v52  ;;  %v279_v61 = vadd.f32 %v753_v7, %v192_v53  ;;  %v280_v62 = vadd.f32 %v753_v7, %v193_v54  ;;  %v281_v63 = vadd.f32 %v753_v7, %v194_v55 }
  0x10   :  { %v356_v2 = vmax.f32 %v276_v56, 0.0  ;;  %v357_v3 = vmax.f32 %v277_v57, 0.0  ;;  %v282_v4 = vadd.f32 %v753_v7, %v195_v58  ;;  %v283_v5 = vadd.f32 %v753_v7, %v196_v59 }
  0x11   :  { %v358_v9 = vmax.f32 %v278_v60, 0.0  ;;  %v359_v10 = vmax.f32 %v279_v61, 0.0  ;;  %v360_v11 = vmax.f32 %v280_v62, 0.0  ;;  %v361_v12 = vmax.f32 %v281_v63, 0.0 }
  0x12   :  { %436 = vst [vmem:[%s1266_s3 + $0x40] sm:$0xff] %v356_v2  ;;  %437 = vst [vmem:[%s1266_s3 + $0x48] sm:$0xff] %v357_v3  ;;  %v362_v14 = vmax.f32 %v282_v4, 0.0  ;;  %v363_v15 = vmax.f32 %v283_v5, 0.0  ;;  %v552_v18 = vunpack.c.l.bf16 %v682_v6  ;;  %v553_v19 = vunpack.c.h.bf16 %v682_v6 }
  0x13   :  { %438 = vst [vmem:[%s1266_s3 + $0x50] sm:$0xff] %v358_v9  ;;  %439 = vst [vmem:[%s1266_s3 + $0x58] sm:$0xff] %v359_v10  ;;  %v556_v20 = vunpack.c.l.bf16 %v683_v8  ;;  %v557_v21 = vunpack.c.h.bf16 %v683_v8  ;;  %v197_v22 = vmul.f32 %v548_v16, %v739_v1  ;;  %v198_v23 = vmul.f32 %v549_v17, %v739_v1  ;;  %v690_v17 = vld [vmem:[%s1263_s0 + $0x88] sm:$0xff]  }
  0x14   :  { %440 = vst [vmem:[%s1266_s3 + $0x60] sm:$0xff] %v360_v11  ;;  %441 = vst [vmem:[%s1266_s3 + $0x68] sm:$0xff] %v361_v12  ;;  %v560_v24 = vunpack.c.l.bf16 %v684_v13  ;;  %v561_v25 = vunpack.c.h.bf16 %v684_v13  ;;  %v199_v26 = vmul.f32 %v552_v18, %v739_v1  ;;  %v200_v27 = vmul.f32 %v553_v19, %v739_v1  ;;  %v689_v12 = vld [vmem:[%s1263_s0 + $0x80] sm:$0xff]   ;;  %v691_v18 = vld [vmem:[%s1263_s0 + $0x90] sm:$0xff]  }
  0x15   :  { %442 = vst [vmem:[%s1266_s3 + $0x70] sm:$0xff] %v362_v14  ;;  %443 = vst [vmem:[%s1266_s3 + $0x78] sm:$0xff] %v363_v15  ;;  %v201_v28 = vmul.f32 %v556_v20, %v739_v1  ;;  %v202_v29 = vmul.f32 %v557_v21, %v739_v1  ;;  %v284_v30 = vadd.f32 %v753_v7, %v197_v22  ;;  %v564_v52 = vunpack.c.l.bf16 %v685_v38 }
  0x16   :  { %v285_v31 = vadd.f32 %v753_v7, %v198_v23  ;;  %v203_v32 = vmul.f32 %v560_v24, %v739_v1  ;;  %v204_v33 = vmul.f32 %v561_v25, %v739_v1  ;;  %v286_v34 = vadd.f32 %v753_v7, %v199_v26  ;;  %v692_v23 = vld [vmem:[%s1263_s0 + $0x98] sm:$0xff]  }
  0x17   :  { %v287_v35 = vadd.f32 %v753_v7, %v200_v27  ;;  %v288_v36 = vadd.f32 %v753_v7, %v201_v28  ;;  %v289_v37 = vadd.f32 %v753_v7, %v202_v29  ;;  %v364_v39 = vmax.f32 %v284_v30, 0.0 }
  0x18   :  { %v365_v40 = vmax.f32 %v285_v31, 0.0  ;;  %v290_v41 = vadd.f32 %v753_v7, %v203_v32  ;;  %v291_v42 = vadd.f32 %v753_v7, %v204_v33  ;;  %v366_v45 = vmax.f32 %v286_v34, 0.0 }
  0x19   :  { %v367_v46 = vmax.f32 %v287_v35, 0.0  ;;  %v368_v47 = vmax.f32 %v288_v36, 0.0  ;;  %v369_v48 = vmax.f32 %v289_v37, 0.0  ;;  %444 = vst [vmem:[%s1266_s3 + $0x80] sm:$0xff] %v364_v39  ;;  %v565_v53 = vunpack.c.h.bf16 %v685_v38 }
  0x1a   :  { %445 = vst [vmem:[%s1266_s3 + $0x88] sm:$0xff] %v365_v40  ;;  %v370_v50 = vmax.f32 %v290_v41, 0.0  ;;  %v371_v51 = vmax.f32 %v291_v42, 0.0  ;;  %446 = vst [vmem:[%s1266_s3 + $0x90] sm:$0xff] %v366_v45  ;;  %v568_v54 = vunpack.c.l.bf16 %v686_v43  ;;  %v569_v55 = vunpack.c.h.bf16 %v686_v43 }
  0x1b   :  { %447 = vst [vmem:[%s1266_s3 + $0x98] sm:$0xff] %v367_v46  ;;  %448 = vst [vmem:[%s1266_s3 + $0xa0] sm:$0xff] %v368_v47  ;;  %v572_v56 = vunpack.c.l.bf16 %v687_v44  ;;  %v573_v57 = vunpack.c.h.bf16 %v687_v44  ;;  %v205_v58 = vmul.f32 %v564_v52, %v739_v1  ;;  %v206_v59 = vmul.f32 %v565_v53, %v739_v1  ;;  %v694_v53 = vld [vmem:[%s1263_s0 + $0xa8] sm:$0xff]  }
  0x1c   :  { %449 = vst [vmem:[%s1266_s3 + $0xa8] sm:$0xff] %v369_v48  ;;  %450 = vst [vmem:[%s1266_s3 + $0xb0] sm:$0xff] %v370_v50  ;;  %v576_v60 = vunpack.c.l.bf16 %v688_v49  ;;  %v577_v61 = vunpack.c.h.bf16 %v688_v49  ;;  %v207_v62 = vmul.f32 %v568_v54, %v739_v1  ;;  %v208_v63 = vmul.f32 %v569_v55, %v739_v1  ;;  %v693_v48 = vld [vmem:[%s1263_s0 + $0xa0] sm:$0xff]   ;;  %v695_v54 = vld [vmem:[%s1263_s0 + $0xb0] sm:$0xff]  }
  0x1d   :  { %451 = vst [vmem:[%s1266_s3 + $0xb8] sm:$0xff] %v371_v51  ;;  %v209_v0 = vmul.f32 %v572_v56, %v739_v1  ;;  %v210_v2 = vmul.f32 %v573_v57, %v739_v1  ;;  %v292_v3 = vadd.f32 %v753_v7, %v205_v58  ;;  %v293_v4 = vadd.f32 %v753_v7, %v206_v59  ;;  %v696_v59 = vld [vmem:[%s1263_s0 + $0xb8] sm:$0xff]  }
  0x1e   :  { %v211_v5 = vmul.f32 %v576_v60, %v739_v1  ;;  %v212_v6 = vmul.f32 %v577_v61, %v739_v1  ;;  %v294_v8 = vadd.f32 %v753_v7, %v207_v62  ;;  %v295_v9 = vadd.f32 %v753_v7, %v208_v63 }
  0x1f   :  { %v296_v10 = vadd.f32 %v753_v7, %v209_v0  ;;  %v297_v11 = vadd.f32 %v753_v7, %v210_v2  ;;  %v372_v13 = vmax.f32 %v292_v3, 0.0  ;;  %v373_v14 = vmax.f32 %v293_v4, 0.0 }
  0x20   :  { %v298_v15 = vadd.f32 %v753_v7, %v211_v5  ;;  %v299_v16 = vadd.f32 %v753_v7, %v212_v6  ;;  %v374_v19 = vmax.f32 %v294_v8, 0.0  ;;  %v375_v20 = vmax.f32 %v295_v9, 0.0 }
  0x21   :  { %v376_v21 = vmax.f32 %v296_v10, 0.0  ;;  %v377_v22 = vmax.f32 %v297_v11, 0.0  ;;  %452 = vst [vmem:[%s1266_s3 + $0xc0] sm:$0xff] %v372_v13  ;;  %453 = vst [vmem:[%s1266_s3 + $0xc8] sm:$0xff] %v373_v14  ;;  %v580_v26 = vunpack.c.l.bf16 %v689_v12  ;;  %v581_v27 = vunpack.c.h.bf16 %v689_v12 }
  0x22   :  { %v378_v24 = vmax.f32 %v298_v15, 0.0  ;;  %v379_v25 = vmax.f32 %v299_v16, 0.0  ;;  %454 = vst [vmem:[%s1266_s3 + $0xd0] sm:$0xff] %v374_v19  ;;  %455 = vst [vmem:[%s1266_s3 + $0xd8] sm:$0xff] %v375_v20  ;;  %v584_v28 = vunpack.c.l.bf16 %v690_v17  ;;  %v585_v29 = vunpack.c.h.bf16 %v690_v17 }
  0x23   :  { %456 = vst [vmem:[%s1266_s3 + $0xe0] sm:$0xff] %v376_v21  ;;  %457 = vst [vmem:[%s1266_s3 + $0xe8] sm:$0xff] %v377_v22  ;;  %v588_v30 = vunpack.c.l.bf16 %v691_v18  ;;  %v589_v31 = vunpack.c.h.bf16 %v691_v18  ;;  %v213_v32 = vmul.f32 %v580_v26, %v739_v1  ;;  %v214_v33 = vmul.f32 %v581_v27, %v739_v1  ;;  %v697_v22 = vld [vmem:[%s1263_s0 + $0xc0] sm:$0xff]   ;;  %v698_v27 = vld [vmem:[%s1263_s0 + $0xc8] sm:$0xff]  }
  0x24   :  { %458 = vst [vmem:[%s1266_s3 + $0xf0] sm:$0xff] %v378_v24  ;;  %459 = vst [vmem:[%s1266_s3 + $0xf8] sm:$0xff] %v379_v25  ;;  %v592_v34 = vunpack.c.l.bf16 %v692_v23  ;;  %v593_v35 = vunpack.c.h.bf16 %v692_v23  ;;  %v215_v36 = vmul.f32 %v584_v28, %v739_v1  ;;  %v216_v37 = vmul.f32 %v585_v29, %v739_v1  ;;  %v699_v28 = vld [vmem:[%s1263_s0 + $0xd0] sm:$0xff]  }
  0x25   :  { %v217_v38 = vmul.f32 %v588_v30, %v739_v1  ;;  %v218_v39 = vmul.f32 %v589_v31, %v739_v1  ;;  %v300_v40 = vadd.f32 %v753_v7, %v213_v32  ;;  %v301_v41 = vadd.f32 %v753_v7, %v214_v33  ;;  %v700_v33 = vld [vmem:[%s1263_s0 + $0xd8] sm:$0xff]  }
  0x26   :  { %v219_v42 = vmul.f32 %v592_v34, %v739_v1  ;;  %v220_v43 = vmul.f32 %v593_v35, %v739_v1  ;;  %v302_v44 = vadd.f32 %v753_v7, %v215_v36  ;;  %v303_v45 = vadd.f32 %v753_v7, %v216_v37 }
  0x27   :  { %v304_v46 = vadd.f32 %v753_v7, %v217_v38  ;;  %v305_v47 = vadd.f32 %v753_v7, %v218_v39  ;;  %v380_v49 = vmax.f32 %v300_v40, 0.0  ;;  %v381_v50 = vmax.f32 %v301_v41, 0.0 }
  0x28   :  { %v306_v51 = vadd.f32 %v753_v7, %v219_v42  ;;  %v307_v52 = vadd.f32 %v753_v7, %v220_v43  ;;  %v382_v55 = vmax.f32 %v302_v44, 0.0  ;;  %v383_v56 = vmax.f32 %v303_v45, 0.0 }
  0x29   :  { %v384_v57 = vmax.f32 %v304_v46, 0.0  ;;  %v385_v58 = vmax.f32 %v305_v47, 0.0  ;;  %460 = vst [vmem:[%s1266_s3 + $0x100] sm:$0xff] %v380_v49  ;;  %461 = vst [vmem:[%s1266_s3 + $0x108] sm:$0xff] %v381_v50  ;;  %v596_v62 = vunpack.c.l.bf16 %v693_v48  ;;  %v597_v63 = vunpack.c.h.bf16 %v693_v48 }
  0x2a   :  { %v386_v60 = vmax.f32 %v306_v51, 0.0  ;;  %v387_v61 = vmax.f32 %v307_v52, 0.0  ;;  %462 = vst [vmem:[%s1266_s3 + $0x110] sm:$0xff] %v382_v55  ;;  %463 = vst [vmem:[%s1266_s3 + $0x118] sm:$0xff] %v383_v56  ;;  %v600_v0 = vunpack.c.l.bf16 %v694_v53  ;;  %v601_v2 = vunpack.c.h.bf16 %v694_v53 }
  0x2b   :  { %464 = vst [vmem:[%s1266_s3 + $0x120] sm:$0xff] %v384_v57  ;;  %465 = vst [vmem:[%s1266_s3 + $0x128] sm:$0xff] %v385_v58  ;;  %v604_v3 = vunpack.c.l.bf16 %v695_v54  ;;  %v605_v4 = vunpack.c.h.bf16 %v695_v54  ;;  %v221_v5 = vmul.f32 %v596_v62, %v739_v1  ;;  %v222_v6 = vmul.f32 %v597_v63, %v739_v1  ;;  %v701_v58 = vld [vmem:[%s1263_s0 + $0xe0] sm:$0xff]   ;;  %v702_v63 = vld [vmem:[%s1263_s0 + $0xe8] sm:$0xff]  }
  0x2c   :  { %466 = vst [vmem:[%s1266_s3 + $0x130] sm:$0xff] %v386_v60  ;;  %467 = vst [vmem:[%s1266_s3 + $0x138] sm:$0xff] %v387_v61  ;;  %v608_v8 = vunpack.c.l.bf16 %v696_v59  ;;  %v609_v9 = vunpack.c.h.bf16 %v696_v59  ;;  %v223_v10 = vmul.f32 %v600_v0, %v739_v1  ;;  %v224_v11 = vmul.f32 %v601_v2, %v739_v1  ;;  %v703_v0 = vld [vmem:[%s1263_s0 + $0xf0] sm:$0xff]  }
  0x2d   :  { %v225_v12 = vmul.f32 %v604_v3, %v739_v1  ;;  %v226_v13 = vmul.f32 %v605_v4, %v739_v1  ;;  %v308_v14 = vadd.f32 %v753_v7, %v221_v5  ;;  %v309_v15 = vadd.f32 %v753_v7, %v222_v6  ;;  %v704_v6 = vld [vmem:[%s1263_s0 + $0xf8] sm:$0xff]  }
  0x2e   :  { %v227_v16 = vmul.f32 %v608_v8, %v739_v1  ;;  %v228_v17 = vmul.f32 %v609_v9, %v739_v1  ;;  %v310_v18 = vadd.f32 %v753_v7, %v223_v10  ;;  %v311_v19 = vadd.f32 %v753_v7, %v224_v11 }
  0x2f   :  { %v312_v20 = vadd.f32 %v753_v7, %v225_v12  ;;  %v313_v21 = vadd.f32 %v753_v7, %v226_v13  ;;  %v388_v23 = vmax.f32 %v308_v14, 0.0  ;;  %v389_v24 = vmax.f32 %v309_v15, 0.0 }
  0x30   :  { %v314_v25 = vadd.f32 %v753_v7, %v227_v16  ;;  %v315_v26 = vadd.f32 %v753_v7, %v228_v17  ;;  %v390_v29 = vmax.f32 %v310_v18, 0.0  ;;  %v391_v30 = vmax.f32 %v311_v19, 0.0 }
  0x31   :  { %v392_v31 = vmax.f32 %v312_v20, 0.0  ;;  %v393_v32 = vmax.f32 %v313_v21, 0.0  ;;  %468 = vst [vmem:[%s1266_s3 + $0x140] sm:$0xff] %v388_v23  ;;  %469 = vst [vmem:[%s1266_s3 + $0x148] sm:$0xff] %v389_v24  ;;  %v612_v36 = vunpack.c.l.bf16 %v697_v22  ;;  %v613_v37 = vunpack.c.h.bf16 %v697_v22 }
  0x32   :  { %v394_v34 = vmax.f32 %v314_v25, 0.0  ;;  %v395_v35 = vmax.f32 %v315_v26, 0.0  ;;  %470 = vst [vmem:[%s1266_s3 + $0x150] sm:$0xff] %v390_v29  ;;  %471 = vst [vmem:[%s1266_s3 + $0x158] sm:$0xff] %v391_v30  ;;  %v616_v38 = vunpack.c.l.bf16 %v698_v27  ;;  %v617_v39 = vunpack.c.h.bf16 %v698_v27 }
  0x33   :  { %472 = vst [vmem:[%s1266_s3 + $0x160] sm:$0xff] %v392_v31  ;;  %473 = vst [vmem:[%s1266_s3 + $0x168] sm:$0xff] %v393_v32  ;;  %v620_v40 = vunpack.c.l.bf16 %v699_v28  ;;  %v621_v41 = vunpack.c.h.bf16 %v699_v28  ;;  %v229_v42 = vmul.f32 %v612_v36, %v739_v1  ;;  %v230_v43 = vmul.f32 %v613_v37, %v739_v1  ;;  %v705_v32 = vld [vmem:[%s1263_s0 + $0x100] sm:$0xff]   ;;  %v706_v37 = vld [vmem:[%s1263_s0 + $0x108] sm:$0xff]  }
  0x34   :  { %474 = vst [vmem:[%s1266_s3 + $0x170] sm:$0xff] %v394_v34  ;;  %475 = vst [vmem:[%s1266_s3 + $0x178] sm:$0xff] %v395_v35  ;;  %v624_v44 = vunpack.c.l.bf16 %v700_v33  ;;  %v625_v45 = vunpack.c.h.bf16 %v700_v33  ;;  %v231_v46 = vmul.f32 %v616_v38, %v739_v1  ;;  %v232_v47 = vmul.f32 %v617_v39, %v739_v1  ;;  %v707_v38 = vld [vmem:[%s1263_s0 + $0x110] sm:$0xff]  }
  0x35   :  { %v233_v48 = vmul.f32 %v620_v40, %v739_v1  ;;  %v234_v49 = vmul.f32 %v621_v41, %v739_v1  ;;  %v316_v50 = vadd.f32 %v753_v7, %v229_v42  ;;  %v317_v51 = vadd.f32 %v753_v7, %v230_v43  ;;  %v708_v43 = vld [vmem:[%s1263_s0 + $0x118] sm:$0xff]  }
  0x36   :  { %v235_v52 = vmul.f32 %v624_v44, %v739_v1  ;;  %v236_v53 = vmul.f32 %v625_v45, %v739_v1  ;;  %v318_v54 = vadd.f32 %v753_v7, %v231_v46  ;;  %v319_v55 = vadd.f32 %v753_v7, %v232_v47 }
  0x37   :  { %v320_v56 = vadd.f32 %v753_v7, %v233_v48  ;;  %v321_v57 = vadd.f32 %v753_v7, %v234_v49  ;;  %v396_v59 = vmax.f32 %v316_v50, 0.0  ;;  %v397_v60 = vmax.f32 %v317_v51, 0.0 }
  0x38   :  { %v322_v61 = vadd.f32 %v753_v7, %v235_v52  ;;  %v323_v62 = vadd.f32 %v753_v7, %v236_v53  ;;  %v398_v2 = vmax.f32 %v318_v54, 0.0  ;;  %v399_v3 = vmax.f32 %v319_v55, 0.0 }
  0x39   :  { %v400_v4 = vmax.f32 %v320_v56, 0.0  ;;  %v401_v5 = vmax.f32 %v321_v57, 0.0  ;;  %476 = vst [vmem:[%s1266_s3 + $0x180] sm:$0xff] %v396_v59  ;;  %477 = vst [vmem:[%s1266_s3 + $0x188] sm:$0xff] %v397_v60  ;;  %v628_v10 = vunpack.c.l.bf16 %v701_v58  ;;  %v629_v11 = vunpack.c.h.bf16 %v701_v58 }
  0x3a   :  { %v402_v8 = vmax.f32 %v322_v61, 0.0  ;;  %v403_v9 = vmax.f32 %v323_v62, 0.0  ;;  %478 = vst [vmem:[%s1266_s3 + $0x190] sm:$0xff] %v398_v2  ;;  %479 = vst [vmem:[%s1266_s3 + $0x198] sm:$0xff] %v399_v3  ;;  %v632_v12 = vunpack.c.l.bf16 %v702_v63  ;;  %v633_v13 = vunpack.c.h.bf16 %v702_v63 }
  0x3b   :  { %480 = vst [vmem:[%s1266_s3 + $0x1a0] sm:$0xff] %v400_v4  ;;  %481 = vst [vmem:[%s1266_s3 + $0x1a8] sm:$0xff] %v401_v5  ;;  %v636_v14 = vunpack.c.l.bf16 %v703_v0  ;;  %v637_v15 = vunpack.c.h.bf16 %v703_v0  ;;  %v237_v16 = vmul.f32 %v628_v10, %v739_v1  ;;  %v238_v17 = vmul.f32 %v629_v11, %v739_v1  ;;  %v709_v5 = vld [vmem:[%s1263_s0 + $0x120] sm:$0xff]   ;;  %v710_v11 = vld [vmem:[%s1263_s0 + $0x128] sm:$0xff]  }
  0x3c   :  { %482 = vst [vmem:[%s1266_s3 + $0x1b0] sm:$0xff] %v402_v8  ;;  %483 = vst [vmem:[%s1266_s3 + $0x1b8] sm:$0xff] %v403_v9  ;;  %v640_v18 = vunpack.c.l.bf16 %v704_v6  ;;  %v641_v19 = vunpack.c.h.bf16 %v704_v6  ;;  %v239_v20 = vmul.f32 %v632_v12, %v739_v1  ;;  %v240_v21 = vmul.f32 %v633_v13, %v739_v1  ;;  %v711_v12 = vld [vmem:[%s1263_s0 + $0x130] sm:$0xff]  }
  0x3d   :  { %v241_v22 = vmul.f32 %v636_v14, %v739_v1  ;;  %v242_v23 = vmul.f32 %v637_v15, %v739_v1  ;;  %v324_v24 = vadd.f32 %v753_v7, %v237_v16  ;;  %v325_v25 = vadd.f32 %v753_v7, %v238_v17  ;;  %v712_v17 = vld [vmem:[%s1263_s0 + $0x138] sm:$0xff]  }
  0x3e   :  { %v243_v26 = vmul.f32 %v640_v18, %v739_v1  ;;  %v244_v27 = vmul.f32 %v641_v19, %v739_v1  ;;  %v326_v28 = vadd.f32 %v753_v7, %v239_v20  ;;  %v327_v29 = vadd.f32 %v753_v7, %v240_v21 }
  0x3f   :  { %v328_v30 = vadd.f32 %v753_v7, %v241_v22  ;;  %v329_v31 = vadd.f32 %v753_v7, %v242_v23  ;;  %v404_v33 = vmax.f32 %v324_v24, 0.0  ;;  %v405_v34 = vmax.f32 %v325_v25, 0.0 }
  0x40   :  { %v330_v35 = vadd.f32 %v753_v7, %v243_v26  ;;  %v331_v36 = vadd.f32 %v753_v7, %v244_v27  ;;  %v406_v39 = vmax.f32 %v326_v28, 0.0  ;;  %v407_v40 = vmax.f32 %v327_v29, 0.0 }
  0x41   :  { %v408_v41 = vmax.f32 %v328_v30, 0.0  ;;  %v409_v42 = vmax.f32 %v329_v31, 0.0  ;;  %484 = vst [vmem:[%s1266_s3 + $0x1c0] sm:$0xff] %v404_v33  ;;  %485 = vst [vmem:[%s1266_s3 + $0x1c8] sm:$0xff] %v405_v34  ;;  %v644_v46 = vunpack.c.l.bf16 %v705_v32  ;;  %v645_v47 = vunpack.c.h.bf16 %v705_v32 }
  0x42   :  { %v410_v44 = vmax.f32 %v330_v35, 0.0  ;;  %v411_v45 = vmax.f32 %v331_v36, 0.0  ;;  %486 = vst [vmem:[%s1266_s3 + $0x1d0] sm:$0xff] %v406_v39  ;;  %487 = vst [vmem:[%s1266_s3 + $0x1d8] sm:$0xff] %v407_v40  ;;  %v648_v48 = vunpack.c.l.bf16 %v706_v37  ;;  %v649_v49 = vunpack.c.h.bf16 %v706_v37 }
  0x43   :  { %488 = vst [vmem:[%s1266_s3 + $0x1e0] sm:$0xff] %v408_v41  ;;  %489 = vst [vmem:[%s1266_s3 + $0x1e8] sm:$0xff] %v409_v42  ;;  %v652_v50 = vunpack.c.l.bf16 %v707_v38  ;;  %v653_v51 = vunpack.c.h.bf16 %v707_v38  ;;  %v245_v52 = vmul.f32 %v644_v46, %v739_v1  ;;  %v246_v53 = vmul.f32 %v645_v47, %v739_v1 }
  0x44   :  { %490 = vst [vmem:[%s1266_s3 + $0x1f0] sm:$0xff] %v410_v44  ;;  %491 = vst [vmem:[%s1266_s3 + $0x1f8] sm:$0xff] %v411_v45  ;;  %v656_v54 = vunpack.c.l.bf16 %v708_v43  ;;  %v657_v55 = vunpack.c.h.bf16 %v708_v43  ;;  %v247_v56 = vmul.f32 %v648_v48, %v739_v1  ;;  %v248_v57 = vmul.f32 %v649_v49, %v739_v1 }
  0x45   :  { %v249_v58 = vmul.f32 %v652_v50, %v739_v1  ;;  %v250_v59 = vmul.f32 %v653_v51, %v739_v1  ;;  %v332_v60 = vadd.f32 %v753_v7, %v245_v52  ;;  %v333_v61 = vadd.f32 %v753_v7, %v246_v53 }
  0x46   :  { %v251_v62 = vmul.f32 %v656_v54, %v739_v1  ;;  %v252_v63 = vmul.f32 %v657_v55, %v739_v1  ;;  %v334_v0 = vadd.f32 %v753_v7, %v247_v56  ;;  %v335_v2 = vadd.f32 %v753_v7, %v248_v57 }
  0x47   :  { %v336_v3 = vadd.f32 %v753_v7, %v249_v58  ;;  %v337_v4 = vadd.f32 %v753_v7, %v250_v59  ;;  %v412_v6 = vmax.f32 %v332_v60, 0.0  ;;  %v413_v8 = vmax.f32 %v333_v61, 0.0 }
  0x48   :  { %v338_v9 = vadd.f32 %v753_v7, %v251_v62  ;;  %v339_v10 = vadd.f32 %v753_v7, %v252_v63  ;;  %v414_v13 = vmax.f32 %v334_v0, 0.0  ;;  %v415_v14 = vmax.f32 %v335_v2, 0.0 }
  0x49   :  { %v416_v15 = vmax.f32 %v336_v3, 0.0  ;;  %v417_v16 = vmax.f32 %v337_v4, 0.0  ;;  %492 = vst [vmem:[%s1266_s3 + $0x200] sm:$0xff] %v412_v6  ;;  %493 = vst [vmem:[%s1266_s3 + $0x208] sm:$0xff] %v413_v8  ;;  %v660_v20 = vunpack.c.l.bf16 %v709_v5  ;;  %v661_v21 = vunpack.c.h.bf16 %v709_v5 }
  0x4a   :  { %v418_v18 = vmax.f32 %v338_v9, 0.0  ;;  %v419_v19 = vmax.f32 %v339_v10, 0.0  ;;  %494 = vst [vmem:[%s1266_s3 + $0x210] sm:$0xff] %v414_v13  ;;  %495 = vst [vmem:[%s1266_s3 + $0x218] sm:$0xff] %v415_v14  ;;  %v664_v22 = vunpack.c.l.bf16 %v710_v11  ;;  %v665_v23 = vunpack.c.h.bf16 %v710_v11 }
  0x4b   :  { %496 = vst [vmem:[%s1266_s3 + $0x220] sm:$0xff] %v416_v15  ;;  %497 = vst [vmem:[%s1266_s3 + $0x228] sm:$0xff] %v417_v16  ;;  %v668_v24 = vunpack.c.l.bf16 %v711_v12  ;;  %v669_v25 = vunpack.c.h.bf16 %v711_v12  ;;  %v253_v26 = vmul.f32 %v660_v20, %v739_v1  ;;  %v254_v27 = vmul.f32 %v661_v21, %v739_v1 }
  0x4c   :  { %498 = vst [vmem:[%s1266_s3 + $0x230] sm:$0xff] %v418_v18  ;;  %499 = vst [vmem:[%s1266_s3 + $0x238] sm:$0xff] %v419_v19  ;;  %v672_v28 = vunpack.c.l.bf16 %v712_v17  ;;  %v673_v29 = vunpack.c.h.bf16 %v712_v17  ;;  %v255_v30 = vmul.f32 %v664_v22, %v739_v1  ;;  %v256_v31 = vmul.f32 %v665_v23, %v739_v1 }
  0x4d   :  { %v257_v32 = vmul.f32 %v668_v24, %v739_v1  ;;  %v258_v33 = vmul.f32 %v669_v25, %v739_v1  ;;  %v340_v34 = vadd.f32 %v753_v7, %v253_v26  ;;  %v341_v35 = vadd.f32 %v753_v7, %v254_v27 }
  0x4e   :  { %v259_v36 = vmul.f32 %v672_v28, %v739_v1  ;;  %v260_v37 = vmul.f32 %v673_v29, %v739_v1  ;;  %v342_v38 = vadd.f32 %v753_v7, %v255_v30  ;;  %v343_v39 = vadd.f32 %v753_v7, %v256_v31 }
  0x4f   :  { %v344_v40 = vadd.f32 %v753_v7, %v257_v32  ;;  %v345_v41 = vadd.f32 %v753_v7, %v258_v33  ;;  %v420_v42 = vmax.f32 %v340_v34, 0.0  ;;  %v421_v43 = vmax.f32 %v341_v35, 0.0 }
  0x50   :  { %v346_v44 = vadd.f32 %v753_v7, %v259_v36  ;;  %v347_v45 = vadd.f32 %v753_v7, %v260_v37  ;;  %v422_v46 = vmax.f32 %v342_v38, 0.0  ;;  %v423_v47 = vmax.f32 %v343_v39, 0.0 }
  0x51   :  { %v424_v48 = vmax.f32 %v344_v40, 0.0  ;;  %v425_v49 = vmax.f32 %v345_v41, 0.0  ;;  %500 = vst [vmem:[%s1266_s3 + $0x240] sm:$0xff] %v420_v42  ;;  %501 = vst [vmem:[%s1266_s3 + $0x248] sm:$0xff] %v421_v43 }
  0x52   :  { %v426_v1 = vmax.f32 %v346_v44, 0.0  ;;  %v427_v50 = vmax.f32 %v347_v45, 0.0  ;;  %502 = vst [vmem:[%s1266_s3 + $0x250] sm:$0xff] %v422_v46  ;;  %503 = vst [vmem:[%s1266_s3 + $0x258] sm:$0xff] %v423_v47 }
  0x53   :  { %504 = vst [vmem:[%s1266_s3 + $0x260] sm:$0xff] %v424_v48  ;;  %505 = vst [vmem:[%s1266_s3 + $0x268] sm:$0xff] %v425_v49 }
  0x54   :  { %506 = vst [vmem:[%s1266_s3 + $0x270] sm:$0xff] %v426_v1  ;;  %507 = vst [vmem:[%s1266_s3 + $0x278] sm:$0xff] %v427_v50 }

// kernel: conv3d_bn_relu.2
= control target key start
LH: loop header
LB: loop body
LE: loop exit
PB: predicated region body
PF: predicated region fallthrough
CT: control target
= control target key end

     0   :  { %s2701_s24 = smov 0   ;;  %s2703_s25 = smov 0   ;;  %s4189_s0 = inlined_call_operand.vmem [shape: bf16[2,6,102,4], index: 0, kind: input, shape index: {}, may-alias: {0,1,2}]   ;;  %s4190_s1 = inlined_call_operand.vmem [shape: bf16[2,6,102,4], index: 1, kind: input, shape index: {}, may-alias: {0,1,2}]   ;;  %s4191_s2 = inlined_call_operand.vmem [shape: bf16[2,6,102,4], index: 2, kind: input, shape index: {}, may-alias: {0,1,2}]   ;;  %s4192_s3 = inlined_call_operand.vmem [shape: bf16[108,128], index: 3, kind: input, shape index: {}]   ;;  %s4193_s4 = inlined_call_operand.vmem [shape: f32[80,1], index: 4, kind: input, shape index: {}]   ;;  %s4194_s5 = inlined_call_operand.vmem [shape: bf16[2,4,80,128], index: 5, kind: output, shape index: {0}]   ;;  %s4195_s6 = inlined_call_operand.vmem [shape: f32[2,4,1,128], index: 6, kind: output, shape index: {1}]   ;;  %s4196_s7 = inlined_call_operand.vmem [shape: f32[2,4,1,128], index: 7, kind: output, shape index: {2}]  }
   0x1   :  { %s2705_s26 = smov 0   ;;  %s2707_s27 = smov 0  }
   0x2   :  { %s2709_s28 = smov 0  }
   0x3 LB: > { %s27_s29 = sadd.s32 1, %s2632_s26  ;;  %s30_s30 = sadd.s32 1, %s2636_s27  ;;  %s2640_s28 = sphi %s2709_s28, %s18_s28   ;;  %s2636_s27 = sphi %s2707_s27, %s4288_s27   ;;  %s2632_s26 = sphi %s2705_s26, %s4287_s26   ;;  %s2628_s25 = sphi %s2703_s25, %s4286_s25   ;;  %s2624_s24 = sphi %s2701_s24, %s4285_s24  }
   0x4   : > { %p28_p0 = scmp.ge.s32.totalorder %s27_s29, 4  ;;  %p2306_p1 = scmp.ge.s32.totalorder %s2640_s28, 1 }
   0x5   : > { %p306_p2 = scmp.lt.s32.totalorder %s2640_s28, 9 }
   0x6   : > { %s4290_s29 = smov (%p28_p0, %s27_s29), 0  ;;  %s4292_s30 = smov (!%p28_p0, %s30_s30), %s2636_s27 }
   0x7   : > { %p307_p3 = pnand %p2306_p1, %p306_p2  ;;  %p32_p4 = scmp.ge.s32.totalorder %s4292_s30, 2 }
   0x9   : > { %s4294_s30 = smov (%p32_p4, %s4292_s30), 0  ;;  %310 = sbr.rel (%p307_p3) target bundleno = 658 (0x292), region = 40 }
  0x10   : > { %p380_p5 = scmp.lt.s32.totalorder %s2628_s25, 1  ;;  %s389_s8 = sadd.s32 1, %s2624_s24  ;;  %vm1314_vm0 = vcmask 1041408   ;;  %vm1452_vm1 = vcmask 1040384   ;;  %vm1254_vm2 = vsmask.f32 2304 }
  0x11   : > { %s400_s9 = sadd.s32 2, %s2624_s24  ;;  %p392_p6 = scmp.lt.s32.totalorder %s389_s8, 5  ;;  %vm502_vm3 = vsmask.f32 7424  ;;  %vm1338_vm4 = vsmask.f32 1280 }
  0x12   : > { %s4296_s25 = smov (!%p380_p5, %s2628_s25), 1  ;;  %p403_p7 = scmp.lt.s32.totalorder %s400_s9, 5  ;;  %vm1476_vm5 = vsmask.f32 256  ;;  %vm557_vm6 = vcmask 1046528   ;;  %vm672_vm8 = vcmask 1045504  }
  0x13   : > { %s2738_s10 = smul.u32 78, %s4296_s25  ;;  %s4298_s8 = smov (!%p392_p6, %s389_s8), 5  ;;  %vm608_vm7 = vsmask.f32 6400  ;;  %vm719_vm9 = vsmask.f32 5376 }
  0x14   : > { %s4300_s9 = smov (!%p403_p7, %s400_s9), 5  ;;  %s2480_s11 = smul.u32 13, %s4298_s8  ;;  %vm763_vm10 = vcmask 1044480   ;;  %vm1036_vm11 = vcmask 31744   ;;  %vm1047_vm12 = vcmask 64512   ;;  %vm4233_vm13 = vcmask 97280  }
  0x15   : > { %s2481_s12 = smul.u32 13, %s4300_s9  ;;  %p382_p8 = scmp.lt.s32.totalorder %s2624_s24, 5  ;;  %vm1069_vm14 = vcmask 130048   ;;  %vm1080_vm15 = vcmask 162816  }
  0x16   : > { %s396_s13 = sadd.s32 %s2480_s11, %s2738_s10  ;;  %s2642_s8 = smov 12  }
  0x17   : > { %s407_s14 = sadd.s32 %s2481_s12, %s2738_s10  ;;  %s2308_s16 = sshll.u32 %s396_s13, 2 }
  0x18   : > { %s2309_s15 = sshll.u32 %s407_s14, 2  ;;  %s2754_s22 = scalar_lea.vmem %s4190_s1, %s2308_s16 }
  0x19   : > { %s2746_s19 = scalar_lea.vmem %s4191_s2, %s2309_s15  ;;  %v2768_v11 = vld [vmem:[%s2754_s22 + $0x8] sm:$0xf]  ;;  %v2771_v12 = vld [vmem:[%s2754_s22 + $0xc] sm:$0xf]  ;;  %v2777_v17 = vld [vmem:[%s2754_s22 + $0x10] sm:$0xf] }
  0x1a   : > { %v461_v0 = vld [vmem:[%s2746_s19] sm:$0xf]  ;;  %v462_v1 = vld [vmem:[%s2746_s19 + $0x4] sm:$0xf]  ;;  %v463_v2 = vld [vmem:[%s2746_s19 + $0x8] sm:$0xf]  ;;  %v2801_v32 = vcombine.low %v2768_v11, %v2771_v12 }
  0x1b   : > { %s2757_s23 = scalar_select %p382_p8, %s2624_s24, 5  ;;  %v464_v3 = vld [vmem:[%s2746_s19 + $0xc] sm:$0xf]  ;;  %v2341_v4 = vcombine.low %v461_v0, %v462_v1  ;;  %v2760_v5 = vcombine.low %v462_v1, %v463_v2  ;;  %v465_v6 = vld [vmem:[%s2746_s19 + $0x10] sm:$0xf] }
  0x1c   : > { %v2763_v7 = vcombine.low %v463_v2, %v464_v3  ;;  %v2765_v8 = vcombine.low %v464_v3, %v465_v6  ;;  %v453_v22 = vld [vmem:[%s2754_s22 + $0x14] sm:$0xf]  ;;  %v454_v28 = vld [vmem:[%s2754_s22 + $0x18] sm:$0xf]  ;;  %v455_v29 = vld [vmem:[%s2754_s22 + $0x1c] sm:$0xf] }
  0x1d   : > { %v1315_v9 = vrot.slane %v2341_v4, 6  ;;  %v1256_v10 = vshrl.u32 %v2341_v4, 16  ;;  %v1453_v14 = vrot.slane %v2760_v5, 7  ;;  %v1259_v16 = vshll.u32 %v2341_v4, 16  ;;  %s2478_s9 = smul.u32 13, %s2757_s23  ;;  %s4220_s11 = smov 24  }
  0x1e   : > { %v1316_v13 = vrot.slane %v2763_v7, 6  ;;  %v1454_v15 = vrot.slane %v2765_v8, 7  ;;  %v1388_v19 = vshrl.u32 %v2760_v5, 16  ;;  %v1391_v20 = vshll.u32 %v2760_v5, 16  ;;  %v2819_v42 = vld [vmem:[%s2746_s19 + $0x14] sm:$0xf] }
  0x1f   : > { %1326 = vrot.lane.b32.xlu0 %v1315_v9, %s2642_s8  ;;  %v1339_v18 = vrot.slane %v1256_v10, 6  ;;  %v2783_v21 = vshrl.u32 %v2763_v7, 16  ;;  %v1340_v24 = vrot.slane %v1259_v16, 7  ;;  %v1258_v25 = vrot.slane %v1256_v10, 5  ;;  %s386_s12 = sadd.s32 %s2738_s10, %s2478_s9  ;;  %s2644_s13 = smov 16  }
  0x20   : > { %v1317_v23 = vsel %vm1314_vm0, %v1315_v9, %v1316_v13  ;;  %v1261_v26 = vrot.slane %v1259_v16, 6  ;;  %v2791_v27 = vshll.u32 %v2763_v7, 16  ;;  %v1455_v30 = vsel %vm1452_vm1, %v1453_v14, %v1454_v15  ;;  %s2645_s14 = smov 8   ;;  %s2307_s10 = sshll.u32 %s386_s12, 2  ;;  %v456_v63 = vld [vmem:[%s2754_s22 + $0x20] sm:$0xf] }
  0x21   : > { %1328 = vrot.lane.b32.xlu1 %v1317_v23, %s2642_s8  ;;  %v1266_v31 = vrot.slane %v2783_v21, 5  ;;  %v2804_v33 = vcombine.low %v2777_v17, %v453_v22  ;;  %v1341_v34 = vor.u32 %v1340_v24, %v1339_v18  ;;  %v1390_v35 = vrot.slane %v1388_v19, 6  ;;  %s2646_s15 = smov 20   ;;  %s2850_s18 = scalar_lea.vmem %s4189_s0, %s2307_s10  ;;  %v457_v0 = vld [vmem:[%s2754_s22 + $0x24] sm:$0xf] }
  0x22   : > { %v1393_v36 = vrot.slane %v1391_v20, 7  ;;  %v1269_v37 = vrot.slane %v2791_v27, 6  ;;  %v831_v38 = vshll.u32 %v2801_v32, 16  ;;  %v835_v39 = vshrl.u32 %v2801_v32, 16  ;;  %s2647_s20 = smov 4   ;;  %s2648_s21 = smov 28  }
  0x23   : > { %1464 = vrot.lane.b32.xlu0 %v1453_v14, %s4220_s11  ;;  %v839_v40 = vshll.u32 %v2804_v33, 16  ;;  %v2816_v41 = vcombine.low %v454_v28, %v455_v29  ;;  %v1262_v43 = vor.u32 %v1261_v26, %v1258_v25  ;;  %v1342_v44 = vrot.slane %v2783_v21, 6  ;;  %v467_v26 = vld [vmem:[%s2746_s19 + $0x18] sm:$0xf]  ;;  %v468_v28 = vld [vmem:[%s2746_s19 + $0x1c] sm:$0xf] }
  0x24   : > { %v1343_v45 = vrot.slane %v2791_v27, 7  ;;  %v2824_v46 = vor.u32 %v1269_v37, %v1266_v31  ;;  %v2826_v47 = vrot.slane %v831_v38, 1  ;;  %v1396_v48 = vshrl.u32 %v2765_v8, 16  ;;  %s2649_s23 = smov 32   ;;  %s2650_s9 = smov 36  }
  0x25   : > { %1466 = vrot.lane.b32.xlu1 %v1455_v30, %s4220_s11  ;;  %v1399_v49 = vshll.u32 %v2765_v8, 16  ;;  %v1394_v50 = vor.u32 %v1393_v36, %v1390_v35  ;;  %v841_v52 = vrot.slane %v839_v40, 1  ;;  %v843_v53 = vshrl.u32 %v2804_v33, 16  ;;  %s2651_s12 = smov 40   ;;  %s2654_s17 = smov 48  }
  0x26   : > { %v837_v51 = vor.u32 %v835_v39, %v2826_v47  ;;  %v847_v54 = vshll.u32 %v2816_v41, 16  ;;  %v2836_v55 = vcombine.low %v465_v6, %v2819_v42  ;;  %v1271_v56 = vsel %vm1254_vm2, %v1262_v43, %v2824_v46  ;;  %s4218_s10 = smov 52   ;;  %s4210_s16 = smov 56  }
  0x27   : > { %1367 = vrot.lane.b32.xlu0 %v1341_v34, %s2644_s13  ;;  %v2841_v57 = vor.u32 %v1343_v45, %v1342_v44  ;;  %v1398_v58 = vrot.slane %v1396_v48, 6  ;;  %v1401_v59 = vrot.slane %v1399_v49, 7  ;;  %v845_v61 = vor.u32 %v843_v53, %v841_v52  ;;  %v459_v44 = vld [vmem:[%s2754_s22 + $0x2c] sm:$0xf]  ;;  %v470_v53 = vld [vmem:[%s2746_s19 + $0x24] sm:$0xf] }
  0x28   : > { %v2845_v60 = vsel %vm502_vm3, %v837_v51, %v841_v52  ;;  %v849_v62 = vrot.slane %v847_v54, 1  ;;  %v2859_v3 = vrot.slane %v1396_v48, 7  ;;  %v2862_v4 = vshrl.u32 %v2836_v55, 16  ;;  %p413_p9 = scmp.lt.s32.totalorder %s2624_s24, 3 }
  0x29   : > { %1299 = vrot.lane.b32.xlu1 %v1262_v43, %s2645_s14  ;;  %v1345_v1 = vsel %vm1338_vm4, %v1341_v34, %v2841_v57  ;;  %v2857_v2 = vor.u32 %v1401_v59, %v1398_v58  ;;  %v1477_v6 = vrot.slane %v1388_v19, 7  ;;  %v2871_v10 = vcombine.low %v456_v63, %v457_v0  ;;  %v458_v43 = vld [vmem:[%s2754_s22 + $0x28] sm:$0xf] }
  0x2a   : > { %v2869_v9 = vsel %vm502_vm3, %v845_v61, %v849_v62  ;;  %v1480_v16 = vor.u32 %v2859_v3, %v1399_v49  ;;  %v1276_v18 = vshll.u32 %v2836_v55, 16  ;;  %v4205_v22 = vrot.slane %v2862_v4, 7  ;;  %v469_v49 = vld [vmem:[%s2746_s19 + $0x20] sm:$0xf]  ;;  %v471_v58 = vld [vmem:[%s2746_s19 + $0x28] sm:$0xf] }
  0x2b   : > { %1440 = vrot.lane.b32.xlu0 %v1394_v50, %s2646_s15  ;;  %v1403_v14 = vsel %vm1338_vm4, %v1394_v50, %v2857_v2  ;;  %v1478_v19 = vor.u32 %v1477_v6, %v1391_v20  ;;  %v1510_v23 = vrot.slane %v2783_v21, 7  ;;  %v851_v24 = vshrl.u32 %v2816_v41, 16  ;;  %s4302_s24 = smov (!%p413_p9, %s2624_s24), 3 }
  0x2c   : > { %v855_v25 = vshll.u32 %v2871_v10, 16  ;;  %v1481_v29 = vsel %vm1476_vm5, %v1477_v6, %v1480_v16  ;;  %v1513_v30 = vor.u32 %v4205_v22, %v1276_v18  ;;  %v1275_v5 = vrot.slane %v2862_v4, 5 }
  0x2d   : > { %1301 = vrot.lane.b32.xlu1 %v1271_v56, %s2645_s14  ;;  %v1278_v20 = vrot.slane %v1276_v18, 6  ;;  %v1511_v31 = vor.u32 %v1510_v23, %v2791_v27  ;;  %v2895_v34 = vcombine.low %v467_v26, %v468_v28  ;;  %v853_v35 = vor.u32 %v851_v24, %v849_v62 }
  0x2e   : > { %v857_v36 = vrot.slane %v855_v25, 1  ;;  %v2898_v37 = vcombine.low %v2819_v42, %v467_v26  ;;  %v1561_v38 = vrot.slane %v2791_v27, 1  ;;  %v1514_v39 = vsel %vm1476_vm5, %v1510_v23, %v1513_v30 }
  0x2f   : > { %1217 = vrot.lane.b32.xlu0 %v2845_v60, %s2647_s20  ;;  %v2903_v40 = vor.u32 %v1278_v20, %v1275_v5  ;;  %v1563_v45 = vrot.slane %v1276_v18, 1  ;;  %v2909_v48 = vshll.u32 %v2895_v34, 16  ;;  %v1346_v42 = vrot.slane %v2862_v4, 6  ;;  %v472_v5 = vld [vmem:[%s2746_s19 + $0x2c] sm:$0xf] }
  0x30   : > { %v2914_v27 = vsel %vm502_vm3, %v853_v35, %v857_v36  ;;  %v1347_v50 = vrot.slane %v1276_v18, 7  ;;  %v1405_v51 = vshrl.u32 %v2898_v37, 16  ;;  %v1408_v52 = vshll.u32 %v2898_v37, 16 }
  0x31   : > { %1369 = vrot.lane.b32.xlu1 %v1345_v1, %s2644_s13  ;;  %v1562_v54 = vor.u32 %v1561_v38, %v2783_v21  ;;  %v4200_v56 = vrot.slane %v2836_v55, 6  ;;  %v1280_v59 = vsel %vm1254_vm2, %v2824_v46, %v2903_v40  ;;  %v2927_v61 = vshrl.u32 %v2895_v34, 16  ;;  %v2936_v21 = vld [vmem:[%s2754_s22 + $0x30] ss:$0 sps:$4 sm:$0x77]  }
  0x32   : > { %v2929_v62 = vcombine.low %v458_v43, %v459_v44  ;;  %v1565_v63 = vor.u32 %v1563_v45, %v2862_v4  ;;  %v4201_v0 = vrot.slane %v2909_v48, 1  ;;  %v2938_v1 = vcombine.low %v469_v49, %v470_v53 }
  0x33   : > { %1219 = vrot.lane.b32.xlu0 %v2869_v9, %s2647_s20  ;;  %v2940_v6 = vcombine.low %v468_v28, %v469_v49  ;;  %v2942_v46 = vor.u32 %v1347_v50, %v1346_v42  ;;  %v1410_v16 = vrot.slane %v1408_v52, 7  ;;  %v2944_v18 = vcombine.low %v470_v53, %v471_v58 }
  0x34   : > { %v1319_v23 = vsel %vm1314_vm0, %v1316_v13, %v4200_v56  ;;  %v859_v24 = vshrl.u32 %v2871_v10, 16  ;;  %v4198_v26 = vrot.slane %v2898_v37, 7  ;;  %v4197_v28 = vrot.slane %v2927_v61, 7 }
  0x35   : > { %1442 = vrot.lane.b32.xlu1 %v1403_v14, %s2646_s15  ;;  %v1407_v14 = vrot.slane %v1405_v51, 6  ;;  %v4199_v25 = vrot.slane %v2940_v6, 7  ;;  %v4206_v30 = vrot.slane %v2944_v18, 7  ;;  %v2968_v20 = vshrl.u32 %v2938_v1, 16 }
  0x36   : > { %v1349_v35 = vsel %vm1338_vm4, %v2841_v57, %v2942_v46  ;;  %v2988_v44 = vor.u32 %v859_v24, %v857_v36  ;;  %v2992_v42 = vcombine.low %v471_v58, %v472_v5  ;;  %v1457_v49 = vsel %vm1452_vm1, %v1454_v15, %v4198_v26 }
  0x37   : > { %1494 = vrot.lane.b32.xlu0 %v1478_v19, %s2648_s21  ;;  %v1564_v19 = vsel %vm502_vm3, %v1562_v54, %v1563_v45  ;;  %v2976_v38 = vor.u32 %v1410_v16, %v1407_v14  ;;  %v2985_v43 = vsel %vm1452_vm1, %v4199_v25, %v4206_v30  ;;  %v1354_v45 = vrot.slane %v2968_v20, 6  ;;  %v3014_v16 = vld [vmem:[%s2746_s19 + $0x30] ss:$0 sps:$4 sm:$0x77]   ;;  %s2653_s19 = smov 44  }
  0x38   : > { %v1516_v50 = vor.u32 %v4197_v28, %v2909_v48  ;;  %v1206_v36 = vshrl.u32 %v2929_v62, 16  ;;  %v1423_v53 = vshrl.u32 %v2944_v18, 16  ;;  %v4203_v54 = vshll.u32 %v2944_v18, 16 }
  0x39   : > { %1496 = vrot.lane.b32.xlu1 %v1481_v29, %s2648_s21  ;;  %v1202_v29 = vshll.u32 %v2929_v62, 16  ;;  %v4204_v8 = vshll.u32 %v2992_v42, 16  ;;  %v1412_v15 = vsel %vm1338_vm4, %v2857_v2, %v2976_v38  ;;  %v4207_v14 = vrot.slane %v2938_v1, 6 }
  0x3a   : > { %v2346_v24 = vcombine.low %v471_v58, %v471_v58  ;;  %v2352_v26 = vcombine.low %v472_v5, %v472_v5  ;;  %v1428_v58 = vrot.slane %v4203_v54, 7  ;;  %v1533_v54 = vshll.u32 %v3014_v16, 16 }
  0x3b   : > { %1537 = vrot.lane.b32.xlu0 %v1511_v31, %s2649_s23  ;;  %v2971_v31 = vshll.u32 %v2938_v1, 16 }
  0x3c   : > { %v1324_v25 = vrot.slane %v2346_v24, 6  ;;  %v1359_v56 = vshrl.u32 %v2346_v24, 16  ;;  %v1362_v2 = vshll.u32 %v2346_v24, 16  ;;  %v1435_v24 = vshll.u32 %v2352_v26, 16 }
  0x3d   : > { %1539 = vrot.lane.b32.xlu1 %v1514_v39, %s2649_s23  ;;  %v2978_v39 = vrot.slane %v1405_v51, 7  ;;  %v1355_v57 = vrot.slane %v2971_v31, 7  ;;  %v1204_v51 = vrot.slane %v1202_v29, 1  ;;  %v4208_v29 = vrot.slane %v2968_v20, 7 }
  0x3e   : > { %v1361_v5 = vrot.slane %v1359_v56, 6  ;;  %v1437_v30 = vrot.slane %v1435_v24, 7 }
  0x3f   : > { %1221 = vrot.lane.b32.xlu0 %v2914_v27, %s2647_s20 }
  0x41   : > { %1549 = vrot.lane.b32.xlu1 %v2763_v7, %s2650_s9  ;;  %v1567_v7 = vsel %vm502_vm3, %v1565_v63, %v4201_v0  ;;  %v1483_v63 = vor.u32 %v2978_v39, %v1408_v52  ;;  %v1425_v0 = vrot.slane %v1423_v53, 6 }
  0x43   : > { %1551 = vrot.lane.b32.xlu0 %v2836_v55, %s2650_s9  ;;  %v1484_v56 = vsel %vm1476_vm5, %v2859_v3, %v1483_v63  ;;  %v4237_v3 = vrot.slane %v2862_v4, 7 }
  0x45   : > { %1303 = vrot.lane.b32.xlu1 %v1280_v59, %s2645_s14  ;;  %v4202_v59 = vshrl.u32 %v2992_v42, 16 }
  0x47   : > { %1578 = vrot.lane.b32.xlu0 %v1564_v19, %s2651_s12  ;;  %v3017_v19 = vor.u32 %v1355_v57, %v1354_v45  ;;  %v1524_v28 = vrot.slane %v4202_v59, 7  ;;  %v1432_v45 = vshrl.u32 %v2352_v26, 16  ;;  %v3031_v57 = vsel %vm1314_vm0, %v4207_v14, %v1324_v25 }
  0x48   : > { %v1364_v59 = vrot.slane %v1362_v2, 7  ;;  %v4235_v25 = vshrl.u32 %v3014_v16, 16  ;;  %v3047_v2 = vrot.slane %v1423_v53, 7  ;;  %v4238_v53 = vshll.u32 %v2936_v21, 16 }
  0x49   : > { %1580 = vrot.lane.b32.xlu1 %v1567_v7, %s2651_s12  ;;  %v1527_v7 = vor.u32 %v4204_v8, %v1524_v28  ;;  %v1434_v13 = vrot.slane %v1432_v45, 6  ;;  %v1462_v8 = vrot.slane %v2352_v26, 7  ;;  %v1491_v52 = vrot.slane %v1432_v45, 7 }
  0x4a   : > { %v1365_v22 = vor.u32 %v1364_v59, %v1361_v5  ;;  %v1532_v14 = vrot.slane %v4235_v25, 7  ;;  %v3066_v63 = vrot.slane %v4238_v53, 1  ;;  %v4239_v5 = vrot.slane %v2909_v48, 1 }
  0x4b   : > { %1330 = vrot.lane.b32.xlu0 %v1319_v23, %s2642_s8  ;;  %v3037_v23 = vsel %vm1476_vm5, %v4208_v29, %v1527_v7  ;;  %v4236_v7 = vrot.slane %v2944_v18, 7  ;;  %v1438_v59 = vor.u32 %v1437_v30, %v1434_v13  ;;  %v1492_v45 = vor.u32 %v1491_v52, %v1435_v24 }
  0x4c   : > { %v3056_v26 = vsel %vm1338_vm4, %v3017_v19, %v1365_v22  ;;  %v1287_v22 = vrot.slane %v2909_v48, 6  ;;  %v1568_v24 = vor.u32 %v4239_v5, %v2927_v61  ;;  %v1569_v25 = vrot.slane %v2971_v31, 1 }
  0x4d   : > { %1371 = vrot.lane.b32.xlu1 %v1349_v35, %s2644_s13  ;;  %v3045_v35 = vor.u32 %v1428_v58, %v1425_v0  ;;  %v3052_v29 = vsel %vm1452_vm1, %v4236_v7, %v1462_v8  ;;  %v1517_v0 = vsel %vm1476_vm5, %v4237_v3, %v1516_v50  ;;  %v1284_v8 = vrot.slane %v2927_v61, 5 }
  0x4e   : > { %v1208_v58 = vor.u32 %v1206_v36, %v1204_v51  ;;  %v3076_v13 = vsel %vm1476_vm5, %v3047_v2, %v1492_v45  ;;  %v1293_v50 = vrot.slane %v2968_v20, 5  ;;  %v1296_v36 = vrot.slane %v2971_v31, 6 }
  0x4f   : > { %1444 = vrot.lane.b32.xlu0 %v1412_v15, %s2646_s15  ;;  %v1535_v15 = vor.u32 %v1533_v54, %v1532_v14  ;;  %v3072_v30 = vsel %vm1338_vm4, %v3045_v35, %v1438_v59  ;;  %v1288_v52 = vor.u32 %v1287_v22, %v1284_v8  ;;  %v1320_v7 = vrot.slane %v2895_v34, 6 }
  0x50   : > { %v1213_v14 = vsel %vm502_vm3, %v1208_v58, %v3066_v63  ;;  %v1350_v59 = vrot.slane %v2927_v61, 6  ;;  %v1351_v45 = vrot.slane %v2909_v48, 7  ;;  %v1414_v3 = vshrl.u32 %v2940_v6, 16 }
  0x51   : > { %1468 = vrot.lane.b32.xlu1 %v1457_v49, %s4220_s11  ;;  %v3079_v4 = vsel %vm1476_vm5, %v1524_v28, %v1535_v15  ;;  %v1205_v49 = vsel %vm502_vm3, %v2988_v44, %v1204_v51  ;;  %v3090_v28 = vor.u32 %v1296_v36, %v1293_v50  ;;  %v1289_v51 = vsel %vm1254_vm2, %v2903_v40, %v1288_v52  ;;  %v449_v15 = vld [vmem:[%s2754_s22 + $0x4] sm:$0xf] }
  0x52   : > { %v1570_v53 = vsel %vm502_vm3, %v1568_v24, %v1569_v25  ;;  %v1352_v22 = vor.u32 %v1351_v45, %v1350_v59  ;;  %v3119_v58 = vcombine.low %v449_v15, %v2768_v11  ;;  %v1485_v45 = vrot.slane %v1414_v3, 7 }
  0x53   : > { %1498 = vrot.lane.b32.xlu0 %v1484_v56, %s2648_s21  ;;  %v448_v56 = vld [vmem:[%s2754_s22] sm:$0xf]  ;;  %v1298_v40 = vsel %vm1254_vm2, %v1288_v52, %v3090_v28  ;;  %v4241_v52 = vrot.slane %v2938_v1, 6  ;;  %vm4234_vm2 = vcmask 261120  }
  0x54   : > { %v3112_v8 = vcombine.low %v448_v56, %v449_v15  ;;  %v1357_v56 = vsel %vm1338_vm4, %v1352_v22, %v3017_v19  ;;  %v4242_v15 = vrot.slane %v2940_v6, 7  ;;  %v4243_v19 = vrot.slane %v2898_v37, 7 }
  0x55   : > { %1541 = vrot.lane.b32.xlu1 %v1517_v0, %s2649_s23  ;;  %v1417_v0 = vshll.u32 %v2940_v6, 16 }
  0x56   : > { %v824_v36 = vshrl.u32 %v3112_v8, 16 }
  0x57   : > { %1223 = vrot.lane.b32.xlu0 %v1205_v49, %s2647_s20  ;;  %v1416_v49 = vrot.slane %v1414_v3, 6  ;;  %v1419_v50 = vrot.slane %v1417_v0, 7  ;;  %v4245_v3 = vrot.slane %v2968_v20, 7 }
  0x59   : > { %1225 = vrot.lane.b32.xlu1 %v1213_v14, %s2647_s20  ;;  %v826_v14 = vshll.u32 %v3112_v8, 16  ;;  %v1420_v11 = vor.u32 %v1419_v50, %v1416_v49  ;;  %v1519_v6 = vor.u32 %v4245_v3, %v2971_v31 }
  0x5b   : > { %1553 = vrot.lane.b32.xlu0 %v2895_v34, %s2650_s9  ;;  %v4240_v34 = vrot.slane %v2836_v55, 6  ;;  %v828_v5 = vrot.slane %v826_v14, 1  ;;  %v1353_v55 = vsel %vm1338_vm4, %v2942_v46, %v1352_v22  ;;  %v1430_v46 = vsel %vm1338_vm4, %v1420_v11, %v3045_v35  ;;  %v438_v22 = vld [vmem:[%s2850_s18 + $0xc] sm:$0xf] }
  0x5d   : > { %1305 = vrot.lane.b32.xlu1 %v1289_v51, %s2645_s14  ;;  %v1321_v48 = vsel %vm1314_vm0, %v4240_v34, %v1320_v7  ;;  %v1323_v51 = vsel %vm1314_vm0, %v1320_v7, %v4241_v52  ;;  %v829_v24 = vor.u32 %v828_v5, %v824_v36  ;;  %v1421_v7 = vsel %vm1338_vm4, %v2976_v38, %v1420_v11 }
  0x5e   : > { %vm4209_vm0 = vcmask 195584   ;;  %vm1124_vm4 = vcmask 293888  }
  0x5f   : > { %1307 = vrot.lane.b32.xlu0 %v1298_v40, %s2645_s14  ;;  %v3135_v59 = vsel %vm502_vm3, %v829_v24, %v2826_v47  ;;  %v1459_v47 = vsel %vm1452_vm1, %v4243_v19, %v4242_v15  ;;  %v1486_v40 = vor.u32 %v1485_v45, %v1417_v0  ;;  %vm1102_vm1 = vcmask 228352  }
  0x61   : > { %1582 = vrot.lane.b32.xlu1 %v1570_v53, %s2651_s12  ;;  %v4244_v53 = vshll.u32 %v2944_v18, 16  ;;  %v1487_v35 = vsel %vm1476_vm5, %v2978_v39, %v1486_v40  ;;  %v1214_v18 = vshrl.u32 %v2936_v21, 16  ;;  %v4247_v39 = vshll.u32 %v2992_v42, 16 }
  0x62   : > { %v4248_v21 = vshrl.u32 %v2992_v42, 16 }
  0x63   : > { %1332 = vrot.lane.b32.xlu0 %v1321_v48, %s2642_s8  ;;  %v1489_v38 = vor.u32 %v3047_v2, %v4244_v53  ;;  %v4246_v2 = vrot.slane %v2927_v61, 7  ;;  %v1216_v31 = vor.u32 %v1214_v18, %v3066_v63  ;;  %v1571_v61 = vor.u32 %v1569_v25, %v2968_v20  ;;  %v435_v48 = vld [vmem:[%s2850_s18] sm:$0xf]  ;;  %v436_v20 = vld [vmem:[%s2850_s18 + $0x4] sm:$0xf] }
  0x64   : > { %v1575_v63 = vrot.slane %v1533_v54, 1  ;;  %v437_v54 = vld [vmem:[%s2850_s18 + $0x8] sm:$0xf] }
  0x65   : > { %1334 = vrot.lane.b32.xlu1 %v1323_v51, %s2642_s8  ;;  %v1490_v37 = vsel %vm1476_vm5, %v1485_v45, %v1489_v38  ;;  %v1520_v0 = vsel %vm1476_vm5, %v4246_v2, %v1519_v6  ;;  %v3199_v49 = vcombine.low %v437_v54, %v438_v22  ;;  %v2319_v50 = vcombine.low %v436_v20, %v437_v54 }
  0x66   : > { %vm1135_vm5 = vcmask 326656  }
  0x67   : > { %1373 = vrot.lane.b32.xlu0 %v1353_v55, %s2644_s13  ;;  %4249 = vst [vmem:[#allocation2_spill] sm:$0xff] %v3199_v49  ;;  %v511_v51 = vshll.u32 %v3199_v49, 16  ;;  %v610_v5 = vshrl.u32 %v2319_v50, 16  ;;  %v613_v55 = vshll.u32 %v2319_v50, 16  ;;  %v559_v15 = vrot.slane %v3199_v49, 1 }
  0x68   : > { %v515_v3 = vshrl.u32 %v3199_v49, 16 }
  0x69   : > { %1375 = vrot.lane.b32.xlu1 %v1357_v56, %s2644_s13  ;;  %v3219_v24 = vrot.slane %v511_v51, 1  ;;  %v612_v19 = vrot.slane %v610_v5, 1  ;;  %v4216_v5 = vmov 0.0  }
  0x6a   : > { %2430 = vmatprep.subr.bf16.mxu0 %v4216_v5  ;;  %2464 = vmatprep.subr.bf16.mxu1 %v4216_v5 }
  0x6b   : > { %1446 = vrot.lane.b32.xlu0 %v1421_v7, %s2646_s15  ;;  %v4250_v7 = vshrl.u32 %v3014_v16, 16 }
  0x6d   : > { %1448 = vrot.lane.b32.xlu1 %v1430_v46, %s2646_s15  ;;  %v1577_v45 = vor.u32 %v1575_v63, %v4250_v7 }
  0x6f   : > { %1470 = vrot.lane.b32.xlu0 %v1459_v47, %s4220_s11 }
  0x71   : > { %1472 = vrot.lane.b32.xlu1 %v2985_v43, %s4220_s11  ;;  %v1572_v43 = vrot.slane %v4247_v39, 1 }
  0x73   : > { %1500 = vrot.lane.b32.xlu0 %v1487_v35, %s2648_s21  ;;  %v1574_v34 = vor.u32 %v1572_v43, %v4248_v21  ;;  %v720_v21 = vrot.slane %v515_v3, 2 }
  0x75   : > { %1502 = vrot.lane.b32.xlu1 %v1490_v37, %s2648_s21  ;;  %v1576_v25 = vsel %vm502_vm3, %v1574_v34, %v1575_v63  ;;  %v721_v34 = vrot.slane %v511_v51, 3 }
  0x77   : > { %1543 = vrot.lane.b32.xlu0 %v1520_v0, %s2649_s23 }
  0x79   : > { %1545 = vrot.lane.b32.xlu1 %v3037_v23, %s2649_s23  ;;  %v1573_v23 = vsel %vm502_vm3, %v1571_v61, %v1572_v43  ;;  %v673_v43 = vrot.slane %v2319_v50, 2 }
  0x7b   : > { %1227 = vrot.lane.b32.xlu0 %v1216_v31, %s2647_s20 }
  0x7d   : > { %1555 = vrot.lane.b32.xlu1 %v2938_v1, %s2650_s9  ;;  %v3191_v1 = vcombine.low %v435_v48, %v436_v20 }
  0x7f   : > { %1557 = vrot.lane.b32.xlu0 %v2992_v42, %s2650_s9  ;;  %v439_v42 = vld [vmem:[%s2850_s18 + $0x10] sm:$0xf]  ;;  %v504_v14 = vshrl.u32 %v3191_v1, 16  ;;  %v558_v46 = vrot.slane %v3191_v1, 1 }
  0x80   : > { %v3204_v36 = vcombine.low %v438_v22, %v439_v42 }
  0x81   : > { %1309 = vrot.lane.b32.xlu1 %v3090_v28, %s2645_s14  ;;  %v506_v28 = vshll.u32 %v3191_v1, 16 }
  0x82   : > { %v621_v11 = vshll.u32 %v3204_v36, 16  ;;  %v588_v38 = vrot.slane %v3204_v36, 1  ;;  %v674_v61 = vrot.slane %v3204_v36, 2 }
  0x83   : > { %1584 = vrot.lane.b32.xlu0 %v1573_v23, %s2651_s12  ;;  %v508_v52 = vrot.slane %v506_v28, 1  ;;  %v722_v28 = vor.u32 %v721_v34, %v720_v21 }
  0x84   : > { %v623_v40 = vrot.slane %v621_v11, 2 }
  0x85   : > { %1586 = vrot.lane.b32.xlu1 %v1576_v25, %s2651_s12  ;;  %v698_v25 = vrot.slane %v3199_v49, 2 }
  0x87   : > { %1336 = vrot.lane.b32.xlu0 %v3031_v57, %s2642_s8  ;;  %v3213_v57 = vld [vmem:[%s2850_s18 + $0x14] sm:$0xf] }
  0x88   : > { %v3222_v56 = vcombine.low %v439_v42, %v3213_v57  ;;  %v675_v42 = vsel %vm672_vm8, %v673_v43, %v674_v61 }
  0x89   : > { %1377 = vrot.lane.b32.xlu1 %v3056_v26, %s2644_s13  ;;  %v618_v26 = vshrl.u32 %v3204_v36, 16  ;;  %v990_v36 = vrot.slane %v3119_v58, 2 }
  0x8a   : > { %v519_v6 = vshll.u32 %v3222_v56, 16  ;;  %v523_v37 = vshrl.u32 %v3222_v56, 16  ;;  %v699_v54 = vrot.slane %v3222_v56, 2  ;;  %v765_v11 = vrot.slane %v3222_v56, 3 }
  0x8b   : > { %1450 = vrot.lane.b32.xlu0 %v3072_v30, %s2646_s15  ;;  %v509_v30 = vor.u32 %v508_v52, %v504_v14  ;;  %v620_v47 = vrot.slane %v618_v26, 1  ;;  %v3275_v14 = vld [vmem:[%s2850_s18 + $0x18] sm:$0xf]  ;;  %v2585_v52 = vld [vmem:[%s4192_s3] sm:$0xff]   ;;  %v764_v26 = vrot.slane %v3199_v49, 3 }
  0x8c   : > { %v723_v63 = vrot.slane %v523_v37, 2  ;;  %v724_v23 = vrot.slane %v519_v6, 3  ;;  %2431 = vmatpush3.bf16.msra.mxu0 %v2585_v52  ;;  %v3293_v7 = vcombine.low %v3213_v57, %v3275_v14  ;;  %2471 = vmatpush3.bf16.msra.mxu1 %v2585_v52  ;;  %v931_v52 = vshll.u32 %v3119_v58, 16 }
  0x8d   : > { %1474 = vrot.lane.b32.xlu1 %v3052_v29, %s4220_s11  ;;  %v514_v35 = vsel %vm502_vm3, %v509_v30, %v3219_v24  ;;  %v3248_v0 = vor.u32 %v623_v40, %v620_v47  ;;  %2432 = vmatprep.subr.bf16.mxu0 %v4216_v5  ;;  %v766_v57 = vsel %vm763_vm10, %v764_v26, %v765_v11 }
  0x8e   : > { %2465 = vmatprep.subr.bf16.mxu1 %v4216_v5 }
  0x8f   : > { %1504 = vrot.lane.b32.xlu0 %v3076_v13, %s2648_s21  ;;  %v615_v13 = vrot.slane %v613_v55, 2  ;;  %v700_v55 = vsel %vm672_vm8, %v698_v25, %v699_v54  ;;  %v2589_v25 = vld [vmem:[%s4192_s3 + $0x18] sm:$0xff]  }
  0x91   : > { %1547 = vrot.lane.b32.xlu1 %v3079_v4, %s2649_s23  ;;  %v3226_v29 = vpop.permute.xlu0 %1326  ;;  %v587_v4 = vrot.slane %v2319_v50, 1  ;;  %v616_v2 = vor.u32 %v615_v13, %v612_v19  ;;  %v3272_v50 = vor.u32 %v724_v23, %v723_v63  ;;  %v3299_v19 = vrot.slane %v519_v6, 1  ;;  %v2586_v13 = vld [vmem:[%s4192_s3 + $0x8] sm:$0xff]   ;;  %v2587_v6 = vld [vmem:[%s4192_s3 + $0x10] sm:$0xff]  }
  0x92   : > { %2433 = vmatpush3.bf16.msra.mxu0 %v2586_v13  ;;  %2472 = vmatpush3.bf16.msra.mxu1 %v2586_v13  ;;  %v877_v23 = vrot.slane %v3112_v8, 1 }
  0x93   : > { %v3232_v53 = vpop.permute.xlu1 %1328  ;;  %1559 = vrot.lane.b32.xlu0 %v3014_v16, %s2650_s9  ;;  %v560_v16 = vsel %vm557_vm6, %v558_v46, %v559_v15  ;;  %v589_v39 = vsel %vm557_vm6, %v587_v4, %v588_v38  ;;  %v625_v20 = vsel %vm608_vm7, %v616_v2, %v3248_v0  ;;  %v517_v46 = vor.u32 %v515_v3, %v3219_v24 }
  0x94   : > { %v627_v24 = vshrl.u32 %v3293_v7, 16  ;;  %v630_v4 = vshll.u32 %v3293_v7, 16  ;;  %2434 = vmatprep.subr.bf16.mxu0 %v4216_v5  ;;  %v561_v3 = vrot.slane %v3222_v56, 1  ;;  %2466 = vmatprep.subr.bf16.mxu1 %v4216_v5  ;;  %v3325_v2 = vcombine.low %v2771_v12, %v2777_v17 }
  0x95   : > { %1588 = vrot.lane.b32.xlu1 %v1577_v45, %s2651_s12  ;;  %v3243_v18 = vpop.permute.xlu0 %1464  ;;  %v726_v45 = vsel %vm719_vm9, %v722_v28, %v3272_v50  ;;  %v590_v17 = vrot.slane %v3293_v7, 1  ;;  %v3351_v28 = vld [vmem:[%s2850_s18 + $0x1c] sm:$0xf] }
  0x96   : > { %2435 = vmatpush3.bf16.msra.mxu0 %v2587_v6  ;;  %v629_v34 = vrot.slane %v627_v24, 1  ;;  %v632_v63 = vrot.slane %v630_v4, 2  ;;  %v562_v12 = vsel %vm557_vm6, %v559_v15, %v561_v3  ;;  %2473 = vmatpush3.bf16.msra.mxu1 %v2587_v6  ;;  %v928_v15 = vshrl.u32 %v3119_v58, 16 }
  0x97   : > { %v3250_v31 = vpop.permute.xlu1 %1466  ;;  %547 = vrot.lane.b32.xlu0 %v514_v35, %s2647_s20  ;;  %v522_v35 = vsel %vm502_vm3, %v517_v46, %v3299_v19  ;;  %2436 = vmatprep.subr.bf16.mxu0 %v4216_v5  ;;  %v939_v46 = vshll.u32 %v3325_v2, 16 }
  0x98   : > { %2467 = vmatprep.subr.bf16.mxu1 %v4216_v5  ;;  %v3364_v13 = vor.u32 %v632_v63, %v629_v34  ;;  %v930_v6 = vrot.slane %v928_v15, 1 }
  0x99   : > { %569 = vrot.lane.b32.xlu1 %v560_v16, %s2645_s14  ;;  %v3260_v48 = vpop.permute.xlu0 %1367 }
  0x9a   : > { %2437 = vmatpush3.bf16.msra.mxu0 %v2589_v25  ;;  %2474 = vmatpush3.bf16.msra.mxu1 %v2589_v25  ;;  %v2592_v25 = vld [vmem:[%s4192_s3 + $0x28] sm:$0xff]  }
  0x9b   : > { %v3266_v22 = vpop.permute.xlu1 %1299  ;;  %598 = vrot.lane.b32.xlu0 %v589_v39, %s2642_s8  ;;  %2438 = vmatprep.subr.bf16.mxu0 %v4216_v5 }
  0x9c   : > { %2468 = vmatprep.subr.bf16.mxu1 %v4216_v5 }
  0x9d   : > { %662 = vrot.lane.b32.xlu1 %v625_v20, %s2644_s13  ;;  %v3281_v51 = vpop.permute.xlu0 %1440  ;;  %v878_v20 = vrot.slane %v2801_v32, 1 }
  0x9f   : > { %v1302_v30 = vpop.permute.xlu1 %1301  ;;  %684 = vrot.lane.b32.xlu0 %v675_v42, %s2646_s15 }
  0xa1   : > { %709 = vrot.lane.b32.xlu1 %v700_v55, %s4220_s11  ;;  %v1218_v47 = vpop.permute.xlu0 %1217 }
  0xa2   : > { %v1591_v39 = vsel %vm1036_vm11, %v2801_v32, %v1218_v47  ;;  %v3369_v47 = vcombine.low %v3275_v14, %v3351_v28 }
  0xa3   : > { %v3309_v40 = vpop.permute.xlu1 %1369  ;;  %753 = vrot.lane.b32.xlu0 %v726_v45, %s2648_s21  ;;  %v1603_v55 = vsel %vm1047_vm12, %v1591_v39, %v3266_v22  ;;  %v936_v45 = vshrl.u32 %v3325_v2, 16  ;;  %v591_v22 = vsel %vm557_vm6, %v588_v38, %v590_v17  ;;  %v906_v38 = vrot.slane %v3119_v58, 1 }
  0xa4   : > { %4251 = vst [vmem:[#allocation3_spill] sm:$0xff] %v3369_v47  ;;  %v1615_v24 = vsel %vm4233_vm13, %v1603_v55, %v3226_v29 }
  0xa5   : > { %775 = vrot.lane.b32.xlu1 %v766_v57, %s2649_s23  ;;  %v1220_v16 = vpop.permute.xlu0 %1219  ;;  %v2591_v57 = vld [vmem:[%s4192_s3 + $0x20] sm:$0xff]   ;;  %v938_v39 = vrot.slane %v936_v45, 1  ;;  %v1627_v63 = vsel %vm1069_vm14, %v1615_v24, %v3260_v48  ;;  %v2593_v45 = vld [vmem:[%s4192_s3 + $0x30] sm:$0x3f]  }
  0xa6   : > { %v1593_v43 = vsel %vm1036_vm11, %v2804_v33, %v1220_v16  ;;  %v933_v16 = vrot.slane %v931_v52, 2  ;;  %2439 = vmatpush3.bf16.msra.mxu0 %v2591_v57  ;;  %2475 = vmatpush3.bf16.msra.mxu1 %v2591_v57  ;;  %v1639_v55 = vsel %vm1080_vm15, %v1627_v63, %v3281_v51 }
  0xa7   : > { %v3331_v21 = vpop.permute.xlu1 %1442  ;;  %549 = vrot.lane.b32.xlu0 %v522_v35, %s2647_s20  ;;  %v1605_v26 = vsel %vm1047_vm12, %v1593_v43, %v1302_v30  ;;  %v879_v30 = vsel %vm557_vm6, %v877_v23, %v878_v20  ;;  %v907_v35 = vrot.slane %v3325_v2, 1  ;;  %v941_v43 = vrot.slane %v939_v46, 2  ;;  %2440 = vmatprep.subr.bf16.mxu0 %v4216_v5 }
  0xa8   : > { %v1617_v14 = vsel %vm4233_vm13, %v1605_v26, %v3232_v53  ;;  %v676_v53 = vrot.slane %v3293_v7, 2  ;;  %v531_v23 = vshrl.u32 %v3369_v47, 16  ;;  %2469 = vmatprep.subr.bf16.mxu1 %v4216_v5  ;;  %v701_v46 = vrot.slane %v3369_v47, 2 }
  0xa9   : > { %810 = vrot.lane.b32.xlu1 %v3112_v8, %s2650_s9  ;;  %v3348_v42 = vpop.permute.xlu0 %1494  ;;  %v1629_v34 = vsel %vm1069_vm14, %v1617_v14, %v3309_v40  ;;  %v908_v48 = vsel %vm557_vm6, %v906_v38, %v907_v35  ;;  %v934_v40 = vor.u32 %v933_v16, %v930_v6  ;;  %v3415_v15 = vor.u32 %v941_v43, %v938_v39  ;;  %v443_v16 = vld [vmem:[%s2850_s18 + $0x20] sm:$0xf]  ;;  %v3454_v39 = vld [vmem:[%s2850_s18 + $0x24] sm:$0xf] }
  0xaa   : > { %2441 = vmatpush3.bf16.msra.mxu0 %v2592_v25  ;;  %v1641_v52 = vsel %vm1080_vm15, %v1629_v34, %v3331_v21  ;;  %v677_v21 = vsel %vm672_vm8, %v674_v61, %v676_v53  ;;  %v727_v51 = vrot.slane %v531_v23, 2  ;;  %2476 = vmatpush3.bf16.msra.mxu1 %v2592_v25  ;;  %v1846_v61 = vsel %vm672_vm8, %v2593_v45, 0 }
  0xab   : > { %v3361_v8 = vpop.permute.xlu1 %1496  ;;  %571 = vrot.lane.b32.xlu0 %v562_v12, %s2645_s14  ;;  %v527_v12 = vshll.u32 %v3369_v47, 16  ;;  %2442 = vmatprep.subr.bf16.mxu0 %v4216_v5  ;;  %v1651_v57 = vsel %vm4209_vm0, %v1639_v55, %v3243_v18  ;;  %v1653_v24 = vsel %vm4209_vm0, %v1641_v52, %v3250_v31  ;;  %v943_v14 = vsel %vm608_vm7, %v934_v40, %v3415_v15 }
  0xac   : > { %2470 = vmatprep.subr.bf16.mxu1 %v4216_v5  ;;  %v991_v38 = vrot.slane %v3325_v2, 2  ;;  %v1663_v6 = vsel %vm1102_vm1, %v1651_v57, %v3348_v42  ;;  %v702_v31 = vsel %vm672_vm8, %v699_v54, %v701_v46  ;;  %vm4214_vm0 = vmmov 0  }
  0xad   : > { %867 = vrot.lane.b32.xlu1 %v3135_v59, %s2651_s12  ;;  %v1538_v4 = vpop.permute.xlu0 %1537  ;;  %v634_v59 = vsel %vm608_vm7, %v3248_v0, %v3364_v13  ;;  %2444 = vmatprep.mubr.msk.bf16.mxu0 %vm4214_vm0, %v4216_v5  ;;  %v1665_v42 = vsel %vm1102_vm1, %v1653_v24, %v3361_v8  ;;  %v1015_v34 = vrot.slane %v2801_v32, 2  ;;  %v1016_v54 = vrot.slane %v2804_v33, 2 }
  0xae   : > { %2443 = vmatpush3.bf16.msra.mxu0 %v1846_v61  ;;  %v1675_v18 = vsel %vm4234_vm2, %v1663_v6, %v1538_v4  ;;  %2477 = vmatpush3.bf16.msra.mxu1 %v1846_v61  ;;  %v992_v8 = vsel %vm672_vm8, %v990_v36, %v991_v38  ;;  %v529_v24 = vrot.slane %v527_v12, 1 }
  0xaf   : > { %v3391_v29 = vpop.permute.xlu1 %1539  ;;  %600 = vrot.lane.b32.xlu0 %v591_v22, %s2642_s8  ;;  %v728_v22 = vrot.slane %v527_v12, 3  ;;  %2456 = vmatprep.mubr.msk.bf16.mxu1 %vm4214_vm0, %v4216_v5  ;;  %v1017_v57 = vsel %vm672_vm8, %v1015_v34, %v1016_v54  ;;  %vm4253_vm0 = vcmask 195584  }
  0xb0   : > { %v1677_v63 = vsel %vm4234_vm2, %v1665_v42, %v3391_v29  ;;  %v533_v34 = vor.u32 %v531_v23, %v529_v24 }
  0xb1   : > { %888 = vrot.lane.b32.xlu1 %v879_v30, %s2653_s19  ;;  %v3409_v0 = vpop.permute.xlu0 %1221  ;;  %v3462_v43 = vor.u32 %v728_v22, %v727_v51 }
  0xb3   : > { %v1550_v26 = vpop.permute.xlu1 %1549  ;;  %664 = vrot.lane.b32.xlu0 %v634_v59, %s2644_s13  ;;  %v730_v29 = vsel %vm719_vm9, %v3272_v50, %v3462_v43 }
  0xb4   : > { %v1687_v59 = vsel %vm1124_vm4, %v1675_v18, %v1550_v26 }
  0xb5   : > { %917 = vrot.lane.b32.xlu1 %v908_v48, %s2654_s17  ;;  %v1552_v30 = vpop.permute.xlu0 %1551  ;;  %v3481_v48 = vcombine.low %v443_v16, %v3454_v39 }
  0xb6   : > { %v1689_v40 = vsel %vm1124_vm4, %v1677_v63, %v1552_v30 }
  0xb7   : > { %v3449_v58 = vpop.permute.xlu1 %1303  ;;  %686 = vrot.lane.b32.xlu0 %v677_v21, %s2646_s15  ;;  %4252 = vst [vmem:[#allocation4_spill] sm:$0xff] %v3481_v48  ;;  %v767_v21 = vrot.slane %v3369_v47, 3  ;;  %v535_v50 = vshll.u32 %v3481_v48, 16 }
  0xb9   : > { %980 = vrot.lane.b32.xlu1 %v943_v14, %s4218_s10  ;;  %v1579_v4 = vpop.permute.xlu0 %1578  ;;  %v768_v42 = vsel %vm763_vm10, %v765_v11, %v767_v21  ;;  %v3519_v63 = vrot.slane %v535_v50, 1 }
  0xba   : > { %v1699_v25 = vsel %vm1135_vm5, %v1687_v59, %v1579_v4  ;;  %v525_v59 = vor.u32 %v523_v37, %v3299_v19 }
  0xbb   : > { %v1710_v52 = vshrl.u32 %v1699_v25, 16  ;;  %v1713_v55 = vshll.u32 %v1699_v25, 16  ;;  %v1581_v26 = vpop.permute.xlu1 %1580  ;;  %711 = vrot.lane.b32.xlu0 %v702_v31, %s4220_s11  ;;  %v538_v23 = vsel %vm502_vm3, %v533_v34, %v3519_v63 }
  0xbc   : > { %v1701_v45 = vsel %vm1135_vm5, %v1689_v40, %v1581_v26  ;;  %v530_v19 = vsel %vm502_vm3, %v525_v59, %v529_v24  ;;  %v3534_v40 = vcombine.low %v3351_v28, %v443_v16  ;;  %v565_v26 = vrot.slane %v3481_v48, 1 }
  0xbd   : > { %v1712_v51 = vrot.slane %v1710_v52, 2  ;;  %v1715_v22 = vrot.slane %v1713_v55, 3  ;;  %v1717_v36 = vshrl.u32 %v1701_v45, 16  ;;  %v1720_v61 = vshll.u32 %v1701_v45, 16  ;;  %1001 = vrot.lane.b32.xlu1 %v992_v8, %s4210_s16  ;;  %v3491_v30 = vpop.permute.xlu0 %1330  ;;  %s4212_s16 = smov 60  }
  0xbe   : > { %v563_v8 = vrot.slane %v3369_v47, 1  ;;  %v3540_v55 = vld [vmem:[%s2850_s18 + $0x28] sm:$0xf]  ;;  %v636_v16 = vshrl.u32 %v3534_v40, 16  ;;  %v880_v59 = vrot.slane %v2804_v33, 1 }
  0xbf   : > { %v1716_v14 = vor.u32 %v1715_v22, %v1712_v51  ;;  %v1719_v6 = vrot.slane %v1717_v36, 2  ;;  %v1722_v18 = vrot.slane %v1720_v61, 3  ;;  %v3499_v31 = vpop.permute.xlu1 %1371  ;;  %755 = vrot.lane.b32.xlu0 %v730_v29, %s2648_s21  ;;  %v3551_v28 = vcombine.low %v3454_v39, %v3540_v55 }
  0xc0   : > { %v564_v29 = vsel %vm557_vm6, %v561_v3, %v563_v8  ;;  %v639_v51 = vshll.u32 %v3534_v40, 16  ;;  %v566_v36 = vsel %vm557_vm6, %v563_v8, %v565_v26  ;;  %v592_v61 = vrot.slane %v3534_v40, 1 }
  0xc1   : > { %v3510_v12 = vor.u32 %v1722_v18, %v1719_v6  ;;  %1026 = vrot.lane.b32.xlu1 %v1017_v57, %s4212_s16  ;;  %v3513_v4 = vpop.permute.xlu0 %1444  ;;  %s2659_s16 = smov 64   ;;  %v645_v3 = vshrl.u32 %v3551_v28, 16  ;;  %v648_v39 = vshll.u32 %v3551_v28, 16  ;;  %v594_v24 = vrot.slane %v3551_v28, 1 }
  0xc2   : > { %v641_v6 = vrot.slane %v639_v51, 2 }
  0xc3   : > { %v3521_v11 = vpop.permute.xlu1 %1468  ;;  %777 = vrot.lane.b32.xlu0 %v768_v42, %s2649_s23  ;;  %v1724_v37 = vsel %vm719_vm9, %v1716_v14, %v3510_v12  ;;  %v638_v14 = vrot.slane %v636_v16, 1  ;;  %v593_v42 = vsel %vm557_vm6, %v590_v17, %v592_v61  ;;  %v647_v34 = vrot.slane %v645_v3, 1  ;;  %v2595_v16 = vld [vmem:[%s2754_s22 + $0x18] sm:$0xf] }
  0xc5   : > { %1757 = vrot.lane.b32.xlu1 %v1724_v37, %s2659_s16  ;;  %v3528_v25 = vpop.permute.xlu0 %1498  ;;  %v650_v37 = vrot.slane %v648_v39, 2  ;;  %v642_v8 = vor.u32 %v641_v6, %v638_v14  ;;  %v1595_v14 = vsel %vm1036_vm11, %v2816_v41, %v3409_v0 }
  0xc7   : > { %v3536_v52 = vpop.permute.xlu1 %1541  ;;  %551 = vrot.lane.b32.xlu0 %v530_v19, %s2647_s20  ;;  %v643_v6 = vsel %vm608_vm7, %v3364_v13, %v642_v8 }
  0xc9   : > { %553 = vrot.lane.b32.xlu1 %v538_v23, %s2647_s20  ;;  %v3544_v45 = vpop.permute.xlu0 %1223  ;;  %v595_v23 = vsel %vm557_vm6, %v592_v61, %v594_v24 }
  0xcb   : > { %v3555_v22 = vpop.permute.xlu1 %1225  ;;  %812 = vrot.lane.b32.xlu0 %v2801_v32, %s2650_s9 }
  0xcd   : > { %573 = vrot.lane.b32.xlu1 %v564_v29, %s2645_s14  ;;  %v3566_v57 = vpop.permute.xlu0 %1553  ;;  %v2594_v29 = vld [vmem:[%s2754_s22 + $0x14] sm:$0xf] }
  0xce   : > { %v3585_v51 = vcombine.low %v2594_v29, %v2595_v16 }
  0xcf   : > { %v3569_v18 = vpop.permute.xlu1 %1305  ;;  %575 = vrot.lane.b32.xlu0 %v566_v36, %s2645_s14  ;;  %v3593_v36 = vor.u32 %v650_v37, %v647_v34  ;;  %v678_v34 = vrot.slane %v3534_v40, 2  ;;  %v3613_v37 = vld [vmem:[%s2850_s18 + $0x2c] sm:$0xf]  ;;  %v4225_v40 = vrot.slane %v3551_v28, 2 }
  0xd0   : > { %v945_v3 = vshrl.u32 %v3585_v51, 16  ;;  %v948_v61 = vshll.u32 %v3585_v51, 16  ;;  %v4226_v32 = vrot.slane %v3585_v51, 1  ;;  %v4256_v49 = vrot.slane %v3585_v51, 1 }
  0xd1   : > { %869 = vrot.lane.b32.xlu1 %v2845_v60, %s2651_s12  ;;  %v3578_v19 = vpop.permute.xlu0 %1307  ;;  %v881_v60 = vsel %vm557_vm6, %v878_v20, %v880_v59  ;;  %v1607_v20 = vsel %vm1047_vm12, %v1595_v14, %v3449_v58  ;;  %v652_v0 = vsel %vm608_vm7, %v642_v8, %v3593_v36  ;;  %v539_v14 = vshrl.u32 %v3481_v48, 16 }
  0xd2   : > { %v947_v13 = vrot.slane %v945_v3, 1  ;;  %v950_v29 = vrot.slane %v948_v61, 2  ;;  %v910_v58 = vsel %vm557_vm6, %v907_v35, %v4226_v32  ;;  %v679_v35 = vsel %vm672_vm8, %v676_v53, %v678_v34 }
  0xd3   : > { %v1583_v17 = vpop.permute.xlu1 %1582  ;;  %602 = vrot.lane.b32.xlu0 %v593_v42, %s2642_s8 }
  0xd4   : > { %v3642_v61 = vor.u32 %v950_v29, %v947_v13 }
  0xd5   : > { %604 = vrot.lane.b32.xlu1 %v595_v23, %s2642_s8  ;;  %v3598_v39 = vpop.permute.xlu0 %1332  ;;  %v1619_v23 = vsel %vm4233_vm13, %v1607_v20, %v3491_v30  ;;  %v3630_v30 = vcombine.low %v3540_v55, %v3613_v37  ;;  %v703_v20 = vrot.slane %v3481_v48, 2 }
  0xd6   : > { %v1631_v8 = vsel %vm1069_vm14, %v1619_v23, %v3499_v31  ;;  %v681_v31 = vsel %vm672_vm8, %v678_v34, %v4225_v40  ;;  %v952_v34 = vsel %vm608_vm7, %v3415_v15, %v3642_v61 }
  0xd7   : > { %v3608_v42 = vpop.permute.xlu1 %1334  ;;  %890 = vrot.lane.b32.xlu0 %v881_v60, %s2653_s19  ;;  %v1643_v3 = vsel %vm1080_vm15, %v1631_v8, %v3513_v4  ;;  %v736_v4 = vshrl.u32 %v3630_v30, 16  ;;  %v739_v7 = vshll.u32 %v3630_v30, 16  ;;  %v4224_v29 = vrot.slane %v3630_v30, 2 }
  0xd8   : > { %v1655_v53 = vsel %vm4253_vm0, %v1643_v3, %v3521_v11  ;;  %v704_v8 = vsel %vm672_vm8, %v701_v46, %v703_v20 }
  0xd9   : > { %666 = vrot.lane.b32.xlu1 %v643_v6, %s2644_s13  ;;  %v3620_v16 = vpop.permute.xlu0 %1373  ;;  %v1667_v13 = vsel %vm1102_vm1, %v1655_v53, %v3528_v25  ;;  %v738_v3 = vrot.slane %v736_v4, 2 }
  0xda   : > { %v1679_v25 = vsel %vm4234_vm2, %v1667_v13, %v3536_v52 }
  0xdb   : > { %v3634_v60 = vpop.permute.xlu1 %1375  ;;  %668 = vrot.lane.b32.xlu0 %v652_v0, %s2644_s13  ;;  %v732_v0 = vrot.slane %v535_v50, 3  ;;  %v4223_v50 = vrot.slane %v3585_v51, 2  ;;  %v1691_v15 = vsel %vm1124_vm4, %v1679_v25, %v3566_v57 }
  0xdc   : > { %v1703_v46 = vsel %vm1135_vm5, %v1691_v15, %v1583_v17 }
  0xdd   : > { %919 = vrot.lane.b32.xlu1 %v910_v58, %s2654_s17  ;;  %v3646_v6 = vpop.permute.xlu0 %1446  ;;  %v731_v58 = vrot.slane %v539_v14, 2  ;;  %v994_v52 = vsel %vm672_vm8, %v991_v38, %v4223_v50  ;;  %v1728_v17 = vshll.u32 %v1703_v46, 16 }
  0xdf   : > { %v3656_v23 = vpop.permute.xlu1 %1448  ;;  %688 = vrot.lane.b32.xlu0 %v679_v35, %s2646_s15  ;;  %v741_v35 = vrot.slane %v739_v7, 3  ;;  %v733_v5 = vor.u32 %v732_v0, %v731_v58  ;;  %v1725_v0 = vshrl.u32 %v1703_v46, 16  ;;  %v769_v58 = vrot.slane %v3481_v48, 3 }
  0xe1   : > { %690 = vrot.lane.b32.xlu1 %v681_v31, %s2646_s15  ;;  %v3668_v11 = vpop.permute.xlu0 %1470  ;;  %v706_v31 = vsel %vm672_vm8, %v703_v20, %v4224_v29  ;;  %v3693_v7 = vor.u32 %v741_v35, %v738_v3  ;;  %v4222_v20 = vrot.slane %v2816_v41, 2  ;;  %v734_v13 = vsel %vm719_vm9, %v3462_v43, %v733_v5 }
  0xe2   : > { %v1730_v3 = vrot.slane %v1728_v17, 3  ;;  %v4221_v35 = vrot.slane %v3630_v30, 3  ;;  %v770_v15 = vsel %vm763_vm10, %v767_v21, %v769_v58 }
  0xe3   : > { %v3676_v53 = vpop.permute.xlu1 %1472  ;;  %982 = vrot.lane.b32.xlu0 %v952_v34, %s4218_s10  ;;  %v2318_v34 = vcombine.low %v3540_v55, %v3540_v55  ;;  %s4254_s10 = smov 56   ;;  %v743_v38 = vsel %vm719_vm9, %v733_v5, %v3693_v7  ;;  %v1019_v43 = vsel %vm672_vm8, %v1016_v54, %v4222_v20  ;;  %v1727_v55 = vrot.slane %v1725_v0, 2  ;;  %v3784_v20 = vld [vmem:[%s2754_s22 + $0x28] sm:$0xf] }
  0xe4   : > { %v772_v54 = vsel %vm763_vm10, %v769_v58, %v4221_v35 }
  0xe5   : > { %713 = vrot.lane.b32.xlu1 %v704_v8, %s4220_s11  ;;  %v3686_v4 = vpop.permute.xlu0 %1500  ;;  %v543_v25 = vshll.u32 %v2318_v34, 16  ;;  %v3727_v46 = vor.u32 %v1730_v3, %v1727_v55 }
  0xe7   : > { %v3695_v57 = vpop.permute.xlu1 %1502  ;;  %715 = vrot.lane.b32.xlu0 %v706_v31, %s4220_s11  ;;  %s4255_s11 = smov 60   ;;  %v545_v0 = vrot.slane %v543_v25, 1  ;;  %v1732_v21 = vsel %vm719_vm9, %v3510_v12, %v3727_v46 }
  0xe9   : > { %1003 = vrot.lane.b32.xlu1 %v994_v52, %s4254_s10  ;;  %v3704_v2 = vpop.permute.xlu0 %1543  ;;  %v541_v52 = vor.u32 %v539_v14, %v3519_v63  ;;  %v567_v63 = vrot.slane %v2318_v34, 1  ;;  %v2324_v14 = vcombine.low %v3613_v37, %v3613_v37 }
  0xeb   : > { %v3709_v8 = vpop.permute.xlu1 %1545  ;;  %757 = vrot.lane.b32.xlu0 %v734_v13, %s2648_s21  ;;  %v568_v55 = vsel %vm557_vm6, %v565_v26, %v567_v63  ;;  %v654_v3 = vshrl.u32 %v2324_v14, 16  ;;  %v657_v34 = vshll.u32 %v2324_v14, 16  ;;  %v596_v37 = vrot.slane %v2324_v14, 1  ;;  %v2597_v26 = vld [vmem:[%s2754_s22 + $0x20] sm:$0xf] }
  0xec   : > { %v682_v48 = vrot.slane %v2324_v14, 2  ;;  %v3825_v14 = vld [vmem:[%s2850_s18 + $0x30] ss:$0 sps:$4 sm:$0x77]   ;;  %s2482_s18 = smul.u32 10, %s4302_s24 }
  0xed   : > { %759 = vrot.lane.b32.xlu1 %v743_v38, %s2648_s21  ;;  %v3719_v5 = vpop.permute.xlu0 %1227  ;;  %v546_v38 = vsel %vm502_vm3, %v541_v52, %v545_v0  ;;  %v656_v52 = vrot.slane %v654_v3, 1  ;;  %v659_v0 = vrot.slane %v657_v34, 2  ;;  %v597_v35 = vsel %vm557_vm6, %v594_v24, %v596_v37  ;;  %v2598_v34 = vld [vmem:[%s2754_s22 + $0x24] sm:$0xf] }
  0xef   : > { %v3724_v31 = vpop.permute.xlu1 %1555  ;;  %1028 = vrot.lane.b32.xlu0 %v1019_v43, %s4255_s11 }
  0xf1   : > { %779 = vrot.lane.b32.xlu1 %v770_v15, %s2649_s23  ;;  %v3734_v17 = vpop.permute.xlu0 %1557 }
  0xf3   : > { %v3736_v13 = vpop.permute.xlu1 %1309  ;;  %781 = vrot.lane.b32.xlu0 %v772_v54, %s2649_s23  ;;  %v882_v54 = vrot.slane %v2816_v41, 1 }
  0xf5   : > { %1759 = vrot.lane.b32.xlu1 %v1732_v21, %s2659_s16  ;;  %v3744_v58 = vpop.permute.xlu0 %1584  ;;  %v2596_v21 = vld [vmem:[%s2754_s22 + $0x1c] sm:$0xf] }
  0xf7   : > { %v3748_v43 = vpop.permute.xlu1 %1586  ;;  %555 = vrot.lane.b32.xlu0 %v546_v38, %s2647_s20  ;;  %v3768_v38 = vcombine.low %v2596_v21, %v2597_v26  ;;  %v3787_v21 = vcombine.low %v2598_v34, %v3784_v20  ;;  %v660_v26 = vor.u32 %v659_v0, %v656_v52  ;;  %s2483_s20 = smul.u32 40, %s4296_s25 }
  0xf9   : > { %814 = vrot.lane.b32.xlu1 %v2804_v33, %s2650_s9  ;;  %v3753_v12 = vpop.permute.xlu0 %1336  ;;  %v954_v24 = vshrl.u32 %v3768_v38, 16  ;;  %v957_v37 = vshll.u32 %v3768_v38, 16  ;;  %v966_v29 = vshll.u32 %v3787_v21, 16  ;;  %v911_v33 = vrot.slane %v3768_v38, 1 }
  0xfa   : > { %v661_v52 = vsel %vm608_vm7, %v3593_v36, %v660_v26  ;;  %v1597_v36 = vsel %vm1036_vm11, %v2871_v10, %v3544_v45  ;;  %v1599_v45 = vsel %vm1036_vm11, %v2929_v62, %v3555_v22 }
  0xfb   : > { %v3758_v25 = vpop.permute.xlu1 %1377  ;;  %816 = vrot.lane.b32.xlu0 %v2816_v41, %s2650_s9  ;;  %v956_v0 = vrot.slane %v954_v24, 1  ;;  %v959_v40 = vrot.slane %v957_v37, 2 }
  0xfd   : > { %577 = vrot.lane.b32.xlu1 %v568_v55, %s2645_s14  ;;  %v3763_v15 = vpop.permute.xlu0 %1450  ;;  %v4228_v55 = vrot.slane %v2871_v10, 1  ;;  %v960_v24 = vor.u32 %v959_v40, %v956_v0 }
  0xff   : > { %v3770_v63 = vpop.permute.xlu1 %1474  ;;  %871 = vrot.lane.b32.xlu0 %v2869_v9, %s2651_s12  ;;  %v883_v9 = vsel %vm557_vm6, %v880_v59, %v882_v54  ;;  %v885_v34 = vsel %vm557_vm6, %v882_v54, %v4228_v55  ;;  %v968_v55 = vrot.slane %v966_v29, 2  ;;  %v1609_v29 = vsel %vm1047_vm12, %v1597_v36, %v3569_v18 }
 0x100   : > { %v1621_v40 = vsel %vm4233_vm13, %v1609_v29, %v3598_v39  ;;  %v748_v18 = vshll.u32 %v3825_v14, 16  ;;  %v961_v0 = vsel %vm608_vm7, %v3642_v61, %v960_v24 }
 0x101   : > { %873 = vrot.lane.b32.xlu1 %v2914_v27, %s2651_s12  ;;  %v3780_v3 = vpop.permute.xlu0 %1504  ;;  %v963_v27 = vshrl.u32 %v3787_v21, 16 }
 0x103   : > { %v3794_v50 = vpop.permute.xlu1 %1547  ;;  %606 = vrot.lane.b32.xlu0 %v597_v35, %s2642_s8  ;;  %v913_v35 = vrot.slane %v3787_v21, 1  ;;  %v965_v54 = vrot.slane %v963_v27, 1  ;;  %s4258_s8 = smov 52  }
 0x105   : > { %892 = vrot.lane.b32.xlu1 %v883_v9, %s2653_s19  ;;  %v3804_v59 = vpop.permute.xlu0 %1559  ;;  %v912_v9 = vsel %vm557_vm6, %v4256_v49, %v911_v33  ;;  %v914_v26 = vsel %vm557_vm6, %v911_v33, %v913_v35  ;;  %v4257_v49 = vrot.slane %v3551_v28, 2  ;;  %v745_v33 = vshrl.u32 %v3825_v14, 16 }
 0x106   : > { %v1611_v28 = vsel %vm1047_vm12, %v1599_v45, %v3578_v19 }
 0x107   : > { %v3809_v32 = vpop.permute.xlu1 %1588  ;;  %894 = vrot.lane.b32.xlu0 %v885_v34, %s2653_s19  ;;  %v683_v27 = vsel %vm672_vm8, %v4257_v49, %v682_v48  ;;  %v3835_v34 = vor.u32 %v968_v55, %v965_v54  ;;  %v1633_v48 = vsel %vm1069_vm14, %v1621_v40, %v3620_v16  ;;  %v1623_v22 = vsel %vm4233_vm13, %v1611_v28, %v3608_v42 }
 0x108   : > { %v1645_v39 = vsel %vm1080_vm15, %v1633_v48, %v3646_v6  ;;  %v707_v54 = vrot.slane %v3825_v14, 2  ;;  %v1635_v19 = vsel %vm1069_vm14, %v1623_v22, %v3634_v60  ;;  %v995_v6 = vrot.slane %v3768_v38, 2 }
 0x109   : > { %670 = vrot.lane.b32.xlu1 %v661_v52, %s2644_s13  ;;  %v3816_v47 = vpop.permute.xlu0 %547  ;;  %v2660_v52 = vmov 0   ;;  %v1657_v16 = vsel %vm4253_vm0, %v1645_v39, %v3668_v11  ;;  %v970_v42 = vsel %vm608_vm7, %v960_v24, %v3835_v34  ;;  %v1647_v61 = vsel %vm1080_vm15, %v1635_v19, %v3656_v23  ;;  %s4261_s13 = smov 24  }
 0x10a   : > { %2543 = vset.pattern.permute.xlu0 %v2660_v52  ;;  %2544 = vset.pattern.permute.xlu1 %v2660_v52  ;;  %v1669_v36 = vsel %vm1102_vm1, %v1657_v16, %v3686_v4  ;;  %v747_v60 = vrot.slane %v745_v33, 2  ;;  %v1659_v11 = vsel %vm4253_vm0, %v1647_v61, %v3676_v53  ;;  %v4259_v4 = vrot.slane %v3630_v30, 2 }
 0x10b   : > { %v3829_v37 = vpop.permute.xlu1 %569  ;;  %921 = vrot.lane.b32.xlu0 %v912_v9, %s2654_s17  ;;  %v1681_v29 = vsel %vm4234_vm2, %v1669_v36, %v3704_v2  ;;  %v1671_v38 = vsel %vm1102_vm1, %v1659_v11, %v3695_v57  ;;  %v3895_v57 = vld [vmem:[%s2754_s22 + $0x30] ss:$0 sps:$4 sm:$0x77]   ;;  %v4260_v33 = vrot.slane %v3585_v51, 2  ;;  %v4262_v16 = vrot.slane %v2816_v41, 2 }
 0x10c   : > { %v1693_v23 = vsel %vm1124_vm4, %v1681_v29, %v3724_v31  ;;  %v708_v49 = vsel %vm672_vm8, %v4259_v4, %v707_v54  ;;  %v1683_v53 = vsel %vm4234_vm2, %v1671_v38, %v3709_v8  ;;  %v1601_v31 = vsel %vm1036_vm11, %v3895_v57, %v3719_v5 }
 0x10d   : > { %923 = vrot.lane.b32.xlu1 %v914_v26, %s2654_s17  ;;  %v3849_v55 = vpop.permute.xlu0 %598  ;;  %v750_v26 = vrot.slane %v748_v18, 3  ;;  %v1705_v2 = vsel %vm1135_vm5, %v1693_v23, %v3744_v58  ;;  %v1695_v40 = vsel %vm1124_vm4, %v1683_v53, %v3734_v17  ;;  %v996_v8 = vsel %vm672_vm8, %v4260_v33, %v995_v6 }
 0x10e   : > { %v1613_v58 = vsel %vm1047_vm12, %v1601_v31, %v3736_v13  ;;  %v1707_v52 = vsel %vm1135_vm5, %v1695_v40, %v3748_v43  ;;  %v1020_v5 = vrot.slane %v2871_v10, 2  ;;  %v1733_v48 = vshrl.u32 %v1705_v2, 16 }
 0x10f   : > { %v3862_v9 = vpop.permute.xlu1 %662  ;;  %692 = vrot.lane.b32.xlu0 %v683_v27, %s2646_s15  ;;  %v997_v27 = vrot.slane %v3787_v21, 2  ;;  %v751_v18 = vor.u32 %v750_v26, %v747_v60  ;;  %v1736_v22 = vshll.u32 %v1705_v2, 16  ;;  %v1625_v51 = vsel %vm4233_vm13, %v1613_v58, %v3753_v12 }
 0x110   : > { %v1741_v13 = vshrl.u32 %v1707_v52, 16  ;;  %v1744_v43 = vshll.u32 %v1707_v52, 16  ;;  %v1022_v54 = vrot.slane %v2929_v62, 2  ;;  %v1637_v19 = vsel %vm1069_vm14, %v1625_v51, %v3758_v25  ;;  %v2601_v25 = vld [vmem:[%s2754_s22 + $0x2c] sm:$0xf] }
 0x111   : > { %984 = vrot.lane.b32.xlu1 %v961_v0, %s4258_s8  ;;  %v3877_v24 = vpop.permute.xlu0 %684  ;;  %v998_v17 = vsel %vm672_vm8, %v995_v6, %v997_v27  ;;  %v752_v0 = vsel %vm719_vm9, %v3693_v7, %v751_v18  ;;  %v773_v6 = vrot.slane %v3825_v14, 3  ;;  %v1735_v61 = vrot.slane %v1733_v48, 2 }
 0x112   : > { %v1738_v36 = vrot.slane %v1736_v22, 3  ;;  %v1649_v7 = vsel %vm1080_vm15, %v1637_v19, %v3763_v15  ;;  %v2332_v60 = vcombine.low %v3784_v20, %v3784_v20  ;;  %v2338_v11 = vcombine.low %v2601_v25, %v2601_v25 }
 0x113   : > { %v3891_v45 = vpop.permute.xlu1 %709  ;;  %986 = vrot.lane.b32.xlu0 %v970_v42, %s4258_s8  ;;  %v1021_v42 = vsel %vm672_vm8, %v4262_v16, %v1020_v5  ;;  %v1743_v29 = vrot.slane %v1741_v13, 2  ;;  %v1746_v41 = vrot.slane %v1744_v43, 3  ;;  %v1023_v14 = vsel %vm672_vm8, %v1020_v5, %v1022_v54 }
 0x114   : > { %v1661_v38 = vsel %vm4253_vm0, %v1649_v7, %v3770_v63  ;;  %v1739_v20 = vor.u32 %v1738_v36, %v1735_v61  ;;  %v4263_v4 = vrot.slane %v3630_v30, 3  ;;  %v863_v53 = vshll.u32 %v2332_v60, 16 }
 0x115   : > { %717 = vrot.lane.b32.xlu1 %v708_v49, %s4261_s13  ;;  %v3910_v28 = vpop.permute.xlu0 %753  ;;  %v1673_v23 = vsel %vm1102_vm1, %v1661_v38, %v3780_v3  ;;  %v972_v31 = vshrl.u32 %v2338_v11, 16  ;;  %v975_v40 = vshll.u32 %v2338_v11, 16  ;;  %v3955_v33 = vor.u32 %v1746_v41, %v1743_v29 }
 0x116   : > { %v774_v49 = vsel %vm763_vm10, %v4263_v4, %v773_v6  ;;  %v1685_v63 = vsel %vm4234_vm2, %v1673_v23, %v3794_v50  ;;  %v1740_v18 = vsel %vm719_vm9, %v3727_v46, %v1739_v20  ;;  %v865_v58 = vrot.slane %v863_v53, 1  ;;  %v1974_v53 = vld [vmem:[%s4193_s4 + $0x18] sm:$0xff] }
 0x117   : > { %v3918_v39 = vpop.permute.xlu1 %775  ;;  %1005 = vrot.lane.b32.xlu0 %v996_v8, %s4254_s10  ;;  %v1038_v8 = vsel %vm1036_vm11, %v3191_v1, %v3816_v47  ;;  %v1697_v3 = vsel %vm1124_vm4, %v1685_v63, %v3804_v59  ;;  %v974_v5 = vrot.slane %v972_v31, 1  ;;  %v977_v50 = vrot.slane %v975_v40, 2  ;;  %v1973_v40 = vld [vmem:[%s4193_s4 + $0x10] sm:$0xff]  ;;  %v1976_v63 = vld [vmem:[%s4193_s4 + $0x28] sm:$0xff] }
 0x118   : > { %v1049_v48 = vsel %vm1047_vm12, %v1038_v8, %v3829_v37  ;;  %v1748_v1 = vsel %vm719_vm9, %v1739_v20, %v3955_v33  ;;  %v886_v47 = vrot.slane %v2332_v60, 1  ;;  %v1709_v22 = vsel %vm1135_vm5, %v1697_v3, %v3809_v32  ;;  %v1972_v20 = vld [vmem:[%s4193_s4 + $0x8] sm:$0xff]  ;;  %v1975_v3 = vld [vmem:[%s4193_s4 + $0x20] sm:$0xff] }
 0x119   : > { %1007 = vrot.lane.b32.xlu1 %v998_v17, %s4254_s10  ;;  %v3927_v12 = vpop.permute.xlu0 %549  ;;  %v1060_v59 = vsel %vm4233_vm13, %v1049_v48, %v3849_v55  ;;  %v866_v51 = vsel %vm502_vm3, %v2988_v44, %v865_v58  ;;  %v915_v17 = vrot.slane %v2338_v11, 1  ;;  %v978_v37 = vor.u32 %v977_v50, %v974_v5  ;;  %vm4265_vm3 = vmmov %vm4253_vm0  ;;  %v1978_v5 = vld [vmem:[%s4193_s4 + $0x38] sm:$0xff]  ;;  %v4268_v50 = vld [vmem:[#allocation3_spill] sm:$0xff] }
 0x11a   : > { %v1749_v43 = vshrl.u32 %v1709_v22, 16  ;;  %v1071_v32 = vsel %vm1069_vm14, %v1060_v59, %v3862_v9  ;;  %v4264_v55 = vrot.slane %v2871_v10, 1  ;;  %v999_v6 = vrot.slane %v2338_v11, 2  ;;  %v1980_v59 = vld [vmem:[%s4193_s4 + $0x48] sm:$0xff] }
 0x11b   : > { %v3937_v26 = vpop.permute.xlu1 %810  ;;  %761 = vrot.lane.b32.xlu0 %v752_v0, %s2648_s21  ;;  %v1752_v0 = vshll.u32 %v1709_v22, 16  ;;  %v1082_v16 = vsel %vm1080_vm15, %v1071_v32, %v3877_v24  ;;  %v1024_v7 = vrot.slane %v3895_v57, 2  ;;  %vm1168_vm10 = vcmask 424960   ;;  %v1977_v22 = vld [vmem:[%s4193_s4 + $0x30] sm:$0xff]  ;;  %s417_s21 = sadd.s32 %s2483_s20, %s2482_s18 }
 0x11c   : > { %v887_v19 = vsel %vm557_vm6, %v4264_v55, %v886_v47  ;;  %v1751_v9 = vrot.slane %v1749_v43, 2  ;;  %v1093_v24 = vsel %vm4265_vm3, %v1082_v16, %v3891_v45  ;;  %v1000_v25 = vsel %vm672_vm8, %v997_v27, %v999_v6 }
 0x11d   : > { %1030 = vrot.lane.b32.xlu1 %v1021_v42, %s4255_s11  ;;  %v3947_v15 = vpop.permute.xlu0 %571  ;;  %v916_v42 = vsel %vm557_vm6, %v913_v35, %v915_v17  ;;  %v1754_v36 = vrot.slane %v1752_v0, 3  ;;  %v1104_v60 = vsel %vm1102_vm1, %v1093_v24, %v3910_v28  ;;  %vm4231_vm6 = vcmask 359424  }
 0x11e   : > { %v1115_v45 = vsel %vm4234_vm2, %v1104_v60, %v3918_v39  ;;  %v1025_v57 = vsel %vm672_vm8, %v1022_v54, %v1024_v7  ;;  %vm1179_vm0 = vcmask 457728   ;;  %vm1190_vm8 = vcmask 490496  }
 0x11f   : > { %v868_v2 = vpop.permute.xlu1 %867  ;;  %1032 = vrot.lane.b32.xlu0 %v1023_v14, %s4255_s11  ;;  %v1126_v28 = vsel %vm1124_vm4, %v1115_v45, %v3937_v26  ;;  %v1971_v26 = vld [vmem:[%s4193_s4] sm:$0xff]  ;;  %vm1767_vm3 = vcmask 523264   ;;  %v4266_v31 = vmov 0.0  }
 0x120   : > { %v1137_v27 = vsel %vm1135_vm5, %v1126_v28, %v868_v2 }
 0x121   : > { %783 = vrot.lane.b32.xlu1 %v774_v49, %s2649_s23  ;;  %v3963_v30 = vpop.permute.xlu0 %600  ;;  %s2310_s23 = sshll.u32 %s417_s21, 2 }
 0x123   : > { %v889_v52 = vpop.permute.xlu1 %888  ;;  %1761 = vrot.lane.b32.xlu0 %v1740_v18, %s2659_s16 }
 0x124   : > { %v1148_v29 = vsel %vm4231_vm6, %v1137_v27, %v889_v52  ;;  %vm4232_vm6 = vcmask 883712  }
 0x125   : > { %1763 = vrot.lane.b32.xlu1 %v1748_v1, %s2659_s16  ;;  %v3979_v46 = vpop.permute.xlu0 %664 }
 0x127   : > { %v918_v13 = vpop.permute.xlu1 %917  ;;  %818 = vrot.lane.b32.xlu0 %v2871_v10, %s2650_s9  ;;  %v979_v10 = vsel %vm608_vm7, %v3835_v34, %v978_v37  ;;  %v1755_v34 = vor.u32 %v1754_v36, %v1751_v9  ;;  %vm1157_vm7 = vcmask 392192  }
 0x128   : > { %v1159_v62 = vsel %vm1157_vm7, %v1148_v29, %v918_v13  ;;  %v1979_v13 = vld [vmem:[%s4193_s4 + $0x40] sm:$0xff] }
 0x129   : > { %875 = vrot.lane.b32.xlu1 %v866_v51, %s2651_s12  ;;  %v3993_v44 = vpop.permute.xlu0 %686  ;;  %v1756_v54 = vsel %vm719_vm9, %v3955_v33, %v1755_v34  ;;  %vm4267_vm9 = vmmov 0  }
 0x12b   : > { %v981_v61 = vpop.permute.xlu1 %980  ;;  %896 = vrot.lane.b32.xlu0 %v887_v19, %s2653_s19  ;;  %s4159_s19 = scalar_lea.vmem %s4194_s5, %s2310_s23 }
 0x12c   : > { %v1170_v41 = vsel %vm1168_vm10, %v1159_v62, %v981_v61 }
 0x12d   : > { %925 = vrot.lane.b32.xlu1 %v916_v42, %s2654_s17  ;;  %v4007_v35 = vpop.permute.xlu0 %711  ;;  %s2311_s17 = sshll.u32 %s4296_s25, 2 }
 0x12f   : > { %v1002_v11 = vpop.permute.xlu1 %1001  ;;  %988 = vrot.lane.b32.xlu0 %v979_v10, %s4258_s8  ;;  %v4269_v10 = vld [vmem:[#allocation2_spill] sm:$0xff] }
 0x130   : > { %v1181_v38 = vsel %vm1179_vm0, %v1170_v41, %v1002_v11  ;;  %v1040_v9 = vsel %vm1036_vm11, %v4269_v10, %v3927_v12 }
 0x131   : > { %1009 = vrot.lane.b32.xlu1 %v1000_v25, %s4254_s10  ;;  %v4021_v21 = vpop.permute.xlu0 %755  ;;  %v1051_v24 = vsel %vm1047_vm12, %v1040_v9, %v3947_v15  ;;  %s425_s10 = sadd.s32 %s2311_s17, %s4302_s24 }
 0x132   : > { %v1062_v7 = vsel %vm4233_vm13, %v1051_v24, %v3963_v30  ;;  %s426_s13 = scalar_lea.vmem %s4195_s6, %s425_s10 }
 0x133   : > { %v1027_v39 = vpop.permute.xlu1 %1026  ;;  %1034 = vrot.lane.b32.xlu0 %v1025_v57, %s4255_s11  ;;  %v1073_v25 = vsel %vm1069_vm14, %v1062_v7, %v3979_v46  ;;  %s433_s11 = scalar_lea.vmem %s4196_s7, %s425_s10 }
 0x134   : > { %v1192_v23 = vsel %vm1190_vm8, %v1181_v38, %v1027_v39  ;;  %v1084_v11 = vsel %vm1080_vm15, %v1073_v25, %v3993_v44 }
 0x135   : > { %1765 = vrot.lane.b32.xlu1 %v1756_v54, %s2659_s16  ;;  %v778_v14 = vpop.permute.xlu0 %777 }
 0x137   : > { %v1758_v4 = vpop.permute.xlu1 %1757  ;;  %1983 = vperm.xlu0 %2543, %v1971_v26  }
 0x138   : > { %v1769_v49 = vsel %vm1767_vm3, %v1192_v23, %v1758_v4 }
 0x139   : > { %2445 = vmatmul.mubr.msk.bf16.vlgmr.msra.gmra.mrb[0].mxu0 %vm4232_vm6, %v1769_v49  ;;  %v552_v2 = vpop.permute.xlu0 %551  ;;  %1988 = vperm.xlu1 %2544, %v1972_v20   ;;  %vm4270_vm6 = vcmask 195584  }
 0x13a   : > { %2448 = vmatprep.mubr.msk.bf16.mxu0 %vm4267_vm9, %v4266_v31  ;;  %v1042_v18 = vsel %vm1036_vm11, %v3222_v56, %v552_v2  ;;  %v1095_v45 = vsel %vm4270_vm6, %v1084_v11, %v4007_v35  ;;  %vm4272_vm6 = vcmask 883712  }
 0x13b   : > { %v554_v33 = vpop.permute.xlu1 %553  ;;  %1998 = vperm.xlu0 %2543, %v1974_v53   ;;  %v1106_v12 = vsel %vm1102_vm1, %v1095_v45, %v4021_v21 }
 0x13c   : > { %v1044_v48 = vsel %vm1036_vm11, %v4268_v50, %v554_v33  ;;  %v1117_v15 = vsel %vm4234_vm2, %v1106_v12, %v778_v14 }
 0x13d   : > { %v813_v8 = vpop.permute.xlu0 %812  ;;  %1993 = vperm.xlu1 %2544, %v1973_v40  }
 0x13e   : > { %v1128_v28 = vsel %vm1124_vm4, %v1117_v15, %v813_v8 }
 0x13f   : > { %v574_v58 = vpop.permute.xlu1 %573  ;;  %2008 = vperm.xlu0 %2543, %v1976_v63  }
 0x140   : > { %v1053_v52 = vsel %vm1047_vm12, %v1042_v18, %v574_v58 }
 0x141   : > { %v576_v1 = vpop.permute.xlu0 %575  ;;  %2003 = vperm.xlu1 %2544, %v1975_v3  }
 0x142   : > { %v1055_v47 = vsel %vm1047_vm12, %v1044_v48, %v576_v1 }
 0x143   : > { %v870_v56 = vpop.permute.xlu1 %869  ;;  %2018 = vperm.xlu0 %2543, %v1978_v5  }
 0x144   : > { %v1139_v27 = vsel %vm1135_vm5, %v1128_v28, %v870_v56 }
 0x145   : > { %v603_v51 = vpop.permute.xlu0 %602  ;;  %2013 = vperm.xlu1 %2544, %v1977_v22  }
 0x146   : > { %v1064_v17 = vsel %vm4233_vm13, %v1053_v52, %v603_v51 }
 0x147   : > { %v605_v37 = vpop.permute.xlu1 %604  ;;  %2028 = vperm.xlu0 %2543, %v1980_v59  }
 0x148   : > { %v1066_v43 = vsel %vm4233_vm13, %v1055_v47, %v605_v37  ;;  %vm4271_vm13 = vcmask 359424  }
 0x149   : > { %v891_v0 = vpop.permute.xlu0 %890  ;;  %2023 = vperm.xlu1 %2544, %v1979_v13  }
 0x14a   : > { %v1150_v46 = vsel %vm4271_vm13, %v1139_v27, %v891_v0  ;;  %vm4273_vm13 = vcmask 195584  }
 0x14b   : > { %v667_v32 = vpop.permute.xlu1 %666 }
 0x14c   : > { %v1075_v5 = vsel %vm1069_vm14, %v1064_v17, %v667_v32 }
 0x14d   : > { %v669_v55 = vpop.permute.xlu0 %668 }
 0x14e   : > { %v1077_v1 = vsel %vm1069_vm14, %v1066_v43, %v669_v55 }
 0x14f   : > { %v920_v19 = vpop.permute.xlu1 %919 }
 0x150   : > { %v1161_v44 = vsel %vm1157_vm7, %v1150_v46, %v920_v19 }
 0x151   : > { %v689_v16 = vpop.permute.xlu0 %688 }
 0x152   : > { %v1086_v50 = vsel %vm1080_vm15, %v1075_v5, %v689_v16 }
 0x153   : > { %v691_v42 = vpop.permute.xlu1 %690 }
 0x154   : > { %v1088_v22 = vsel %vm1080_vm15, %v1077_v1, %v691_v42  ;;  %v4276_v42 = vld [vmem:[#allocation4_spill] sm:$0xff] }
 0x155   : > { %v983_v6 = vpop.permute.xlu0 %982 }
 0x156   : > { %v1172_v39 = vsel %vm1168_vm10, %v1161_v44, %v983_v6 }
 0x157   : > { %v714_v61 = vpop.permute.xlu1 %713 }
 0x158   : > { %v1097_v47 = vsel %vm4273_vm13, %v1086_v50, %v714_v61 }
 0x159   : > { %v716_v36 = vpop.permute.xlu0 %715 }
 0x15b   : > { %v1004_v60 = vpop.permute.xlu1 %1003 }
 0x15c   : > { %v1183_v35 = vsel %vm1179_vm0, %v1172_v39, %v1004_v60 }
 0x15d   : > { %v758_v34 = vpop.permute.xlu0 %757 }
 0x15e   : > { %v1108_v56 = vsel %vm1102_vm1, %v1097_v47, %v758_v34 }
 0x15f   : > { %v760_v57 = vpop.permute.xlu1 %759 }
 0x161   : > { %v1029_v30 = vpop.permute.xlu0 %1028 }
 0x162   : > { %v1194_v21 = vsel %vm1190_vm8, %v1183_v35, %v1029_v30 }
 0x163   : > { %v780_v29 = vpop.permute.xlu1 %779 }
 0x164   : > { %v1119_v13 = vsel %vm4234_vm2, %v1108_v56, %v780_v29 }
 0x165   : > { %v782_v62 = vpop.permute.xlu0 %781 }
 0x167   : > { %v1760_v54 = vpop.permute.xlu1 %1759 }
 0x168   : > { %v1771_v26 = vsel %vm1767_vm3, %v1194_v21, %v1760_v54 }
 0x169   : > { %2449 = vmatmul.mubr.msk.bf16.gmra.mrb[4].mxu0 %vm4272_vm6, %v1771_v26  ;;  %v556_v41 = vpop.permute.xlu0 %555  ;;  %vm4274_vm6 = vmmov %vm4273_vm13  ;;  %vm4275_vm13 = vcmask 359424  }
 0x16a   : > { %2452 = vmatprep.mubr.msk.bf16.mxu0 %vm4267_vm9, %v4266_v31  ;;  %v1099_v51 = vsel %vm4274_vm6, %v1088_v22, %v716_v36  ;;  %v1046_v6 = vsel %vm1036_vm11, %v4276_v42, %v556_v41  ;;  %vm4277_vm6 = vmmov %vm4275_vm13  ;;  %vm4279_vm11 = vcmask 195584  }
 0x16b   : > { %v815_v14 = vpop.permute.xlu1 %814  ;;  %v1110_v37 = vsel %vm1102_vm1, %v1099_v51, %v760_v57 }
 0x16c   : > { %v1130_v17 = vsel %vm1124_vm4, %v1119_v13, %v815_v14  ;;  %v1121_v32 = vsel %vm4234_vm2, %v1110_v37, %v782_v62  ;;  %vm4278_vm2 = vcmask 97280  }
 0x16d   : > { %v817_v38 = vpop.permute.xlu0 %816 }
 0x16e   : > { %v1132_v55 = vsel %vm1124_vm4, %v1121_v32, %v817_v38 }
 0x16f   : > { %v578_v20 = vpop.permute.xlu1 %577 }
 0x170   : > { %v1057_v9 = vsel %vm1047_vm12, %v1046_v6, %v578_v20  ;;  %vm4280_vm12 = vcmask 883712  }
 0x171   : > { %v872_v23 = vpop.permute.xlu0 %871 }
 0x172   : > { %v1141_v43 = vsel %vm1135_vm5, %v1130_v17, %v872_v23 }
 0x173   : > { %v874_v4 = vpop.permute.xlu1 %873 }
 0x174   : > { %v1143_v61 = vsel %vm1135_vm5, %v1132_v55, %v874_v4 }
 0x175   : > { %v607_v49 = vpop.permute.xlu0 %606 }
 0x176   : > { %v1068_v60 = vsel %vm4278_vm2, %v1057_v9, %v607_v49  ;;  %vm4282_vm2 = vmmov %vm4280_vm12 }
 0x177   : > { %v893_v53 = vpop.permute.xlu1 %892 }
 0x178   : > { %v1152_v19 = vsel %vm4275_vm13, %v1141_v43, %v893_v53 }
 0x179   : > { %v895_v2 = vpop.permute.xlu0 %894 }
 0x17a   : > { %v1154_v36 = vsel %vm4277_vm6, %v1143_v61, %v895_v2 }
 0x17b   : > { %v671_v40 = vpop.permute.xlu1 %670 }
 0x17c   : > { %v1079_v34 = vsel %vm1069_vm14, %v1068_v60, %v671_v40  ;;  %vm4281_vm14 = vcmask 261120  }
 0x17d   : > { %v922_v33 = vpop.permute.xlu0 %921 }
 0x17e   : > { %v1163_v10 = vsel %vm1157_vm7, %v1152_v19, %v922_v33 }
 0x17f   : > { %v924_v63 = vpop.permute.xlu1 %923 }
 0x180   : > { %v1165_v25 = vsel %vm1157_vm7, %v1154_v36, %v924_v63 }
 0x181   : > { %v693_v8 = vpop.permute.xlu0 %692 }
 0x182   : > { %v1090_v15 = vsel %vm1080_vm15, %v1079_v34, %v693_v8  ;;  %vm4283_vm15 = vmmov %vm4277_vm6 }
 0x183   : > { %v985_v3 = vpop.permute.xlu1 %984 }
 0x184   : > { %v1174_v24 = vsel %vm1168_vm10, %v1163_v10, %v985_v3 }
 0x185   : > { %v987_v18 = vpop.permute.xlu0 %986 }
 0x186   : > { %v1176_v45 = vsel %vm1168_vm10, %v1165_v25, %v987_v18 }
 0x187   : > { %v718_v58 = vpop.permute.xlu1 %717 }
 0x188   : > { %v1101_v27 = vsel %vm4279_vm11, %v1090_v15, %v718_v58 }
 0x189   : > { %v1006_v52 = vpop.permute.xlu0 %1005 }
 0x18a   : > { %v1185_v11 = vsel %vm1179_vm0, %v1174_v24, %v1006_v52 }
 0x18b   : > { %v1008_v48 = vpop.permute.xlu1 %1007 }
 0x18c   : > { %v1187_v28 = vsel %vm1179_vm0, %v1176_v45, %v1008_v48 }
 0x18d   : > { %v762_v59 = vpop.permute.xlu0 %761 }
 0x18e   : > { %v1112_v44 = vsel %vm1102_vm1, %v1101_v27, %v762_v59  ;;  %vm4284_vm1 = vmmov %vm4282_vm2 }
 0x18f   : > { %v1031_v0 = vpop.permute.xlu1 %1030 }
 0x190   : > { %v1196_v12 = vsel %vm1190_vm8, %v1185_v11, %v1031_v0 }
 0x191   : > { %v1033_v16 = vpop.permute.xlu0 %1032 }
 0x192   : > { %v1198_v46 = vsel %vm1190_vm8, %v1187_v28, %v1033_v16 }
 0x193   : > { %v784_v7 = vpop.permute.xlu1 %783 }
 0x194   : > { %v1123_v62 = vsel %vm4281_vm14, %v1112_v44, %v784_v7 }
 0x195   : > { %v1762_v57 = vpop.permute.xlu0 %1761 }
 0x196   : > { %v1773_v30 = vsel %vm1767_vm3, %v1196_v12, %v1762_v57 }
 0x197   : > { %v1764_v29 = vpop.permute.xlu1 %1763  ;;  %2453 = vmatmul.mubr.msk.bf16.gmra.mrb[8].mxu0 %vm4280_vm12, %v1773_v30 }
 0x198   : > { %v1775_v39 = vsel %vm1767_vm3, %v1198_v46, %v1764_v29 }
 0x199   : > { %2457 = vmatmul.mubr.msk.bf16.vlgmr.msra.gmra.mrb[0].mxu1 %vm4282_vm2, %v1775_v39  ;;  %v819_v35 = vpop.permute.xlu0 %818 }
 0x19a   : > { %v1134_v21 = vsel %vm1124_vm4, %v1123_v62, %v819_v35  ;;  %2460 = vmatprep.mubr.msk.bf16.mxu1 %vm4267_vm9, %v4266_v31 }
 0x19b   : > { %v876_v54 = vpop.permute.xlu1 %875 }
 0x19c   : > { %v1145_v26 = vsel %vm1135_vm5, %v1134_v21, %v876_v54 }
 0x19d   : > { %v897_v41 = vpop.permute.xlu0 %896 }
 0x19e   : > { %v1156_v14 = vsel %vm4283_vm15, %v1145_v26, %v897_v41 }
 0x19f   : > { %v926_v38 = vpop.permute.xlu1 %925 }
 0x1a0   : > { %v1167_v20 = vsel %vm1157_vm7, %v1156_v14, %v926_v38 }
 0x1a1   : > { %v989_v23 = vpop.permute.xlu0 %988 }
 0x1a2   : > { %v1178_v4 = vsel %vm1168_vm10, %v1167_v20, %v989_v23 }
 0x1a3   : > { %v1010_v49 = vpop.permute.xlu1 %1009 }
 0x1a4   : > { %v1189_v53 = vsel %vm1179_vm0, %v1178_v4, %v1010_v49 }
 0x1a5   : > { %v1035_v2 = vpop.permute.xlu0 %1034 }
 0x1a6   : > { %v1200_v31 = vsel %vm1190_vm8, %v1189_v53, %v1035_v2 }
 0x1a7   : > { %v1766_v40 = vpop.permute.xlu1 %1765 }
 0x1a8   : > { %v1777_v33 = vsel %vm1767_vm3, %v1200_v31, %v1766_v40 }
 0x1a9   : > { %2461 = vmatmul.mubr.msk.bf16.gmra.mrb[4].mxu1 %vm4284_vm1, %v1777_v33 }
 0x1b6   : > { %v1984_v63 = vpop.permute.xlu0 %1983 }
 0x1b8   : > { %v1989_v3 = vpop.permute.xlu1 %1988 }
 0x1ba   : > { %v1999_v13 = vpop.permute.xlu0 %1998 }
 0x1bc   : > { %v1994_v59 = vpop.permute.xlu1 %1993 }
 0x1be   : > { %v2009_v36 = vpop.permute.xlu0 %2008 }
 0x1c0   : > { %v2004_v9 = vpop.permute.xlu1 %2003 }
 0x1c2   : > { %v2019_v29 = vpop.permute.xlu0 %2018 }
 0x1c4   : > { %v2014_v7 = vpop.permute.xlu1 %2013 }
 0x1c6   : > { %v2029_v40 = vpop.permute.xlu0 %2028 }
 0x1c8   : > { %v2024_v49 = vpop.permute.xlu1 %2023 }
 0x20c   : > { %v1882_v8 = vpop.f32.mrb[0].mxu0 }
 0x20d   : > { %v2031_v18 = vmul.f32 %v1984_v63, %v1882_v8  ;;  %v2446_v58 = vpop.f32.mrb[1].mxu0 }
 0x20e   : > { %v1885_v52 = vpop.f32.mrb[2].mxu0 }
 0x20f   : > { %v2392_v5 = vpack.c.bf16 %v1885_v52, %v1882_v8  ;;  %v2032_v50 = vmul.f32 %v1989_v3, %v1885_v52  ;;  %v2447_v48 = vpop.f32.mrb[3].mxu0  ;;  %v2057_v1 = vmul.f32 %v2031_v18, %v1882_v8 }
 0x211   : > { %2393 = vst [vmem:[%s4159_s19] sm:$0xff] %v2392_v5   ;;  %v2041_v47 = vadd.f32 %v2032_v50, %v2031_v18  ;;  %v2058_v22 = vmul.f32 %v2032_v50, %v1885_v52 }
 0x213   : > { %v2067_v56 = vadd.f32 %v2058_v22, %v2057_v1 }
 0x23c   : > { %v1890_v51 = vpop.f32.mrb[4].mxu0 }
 0x23d   : > { %v2033_v37 = vmul.f32 %v1994_v59, %v1890_v51  ;;  %v2450_v17 = vpop.f32.mrb[5].mxu0 }
 0x23e   : > { %v1893_v0 = vpop.f32.mrb[6].mxu0 }
 0x23f   : > { %v2059_v32 = vmul.f32 %v2033_v37, %v1890_v51  ;;  %v2397_v43 = vpack.c.bf16 %v1893_v0, %v1890_v51  ;;  %v2042_v55 = vadd.f32 %v2041_v47, %v2033_v37  ;;  %v2034_v19 = vmul.f32 %v1999_v13, %v1893_v0  ;;  %v2451_v16 = vpop.f32.mrb[7].mxu0 }
 0x241   : > { %v2068_v42 = vadd.f32 %v2067_v56, %v2059_v32  ;;  %2414 = vst [vmem:[%s4159_s19 + $0x8] sm:$0xff] %v2397_v43   ;;  %v2043_v6 = vadd.f32 %v2042_v55, %v2034_v19  ;;  %v2060_v61 = vmul.f32 %v2034_v19, %v1893_v0 }
 0x243   : > { %v2069_v10 = vadd.f32 %v2068_v42, %v2060_v61 }
 0x26a   : > { %v1898_v24 = vpop.f32.mrb[8].mxu0 }
 0x26b   : > { %v2035_v60 = vmul.f32 %v2004_v9, %v1898_v24  ;;  %v2454_v25 = vpop.f32.mrb[9].mxu0 }
 0x26c   : > { %v1906_v11 = vpop.f32.mrb[0].mxu1  ;;  %v1901_v34 = vpop.f32.mrb[10].mxu0 }
 0x26d   : > { %v2044_v45 = vadd.f32 %v2043_v6, %v2035_v60  ;;  %v2061_v12 = vmul.f32 %v2035_v60, %v1898_v24  ;;  %v2402_v57 = vpack.c.bf16 %v1901_v34, %v1898_v24  ;;  %v2458_v15 = vpop.f32.mrb[1].mxu1  ;;  %v2455_v28 = vpop.f32.mrb[11].mxu0  ;;  %v2037_v30 = vmul.f32 %v2014_v7, %v1906_v11 }
 0x26e   : > { %v2036_v27 = vmul.f32 %v2009_v36, %v1901_v34  ;;  %v1909_v46 = vpop.f32.mrb[2].mxu1 }
 0x26f   : > { %v2070_v44 = vadd.f32 %v2069_v10, %v2061_v12  ;;  %2415 = vst [vmem:[%s4159_s19 + $0x10] sm:$0xff] %v2402_v57   ;;  %v2407_v39 = vpack.c.bf16 %v1909_v46, %v1906_v11  ;;  %v2459_v62 = vpop.f32.mrb[3].mxu1  ;;  %v2038_v54 = vmul.f32 %v2019_v29, %v1909_v46  ;;  %v2063_v26 = vmul.f32 %v2037_v30, %v1906_v11 }
 0x270   : > { %v2045_v35 = vadd.f32 %v2044_v45, %v2036_v27  ;;  %v2062_v21 = vmul.f32 %v2036_v27, %v1901_v34 }
 0x271   : > { %2416 = vst [vmem:[%s4159_s19 + $0x18] sm:$0xff] %v2407_v39   ;;  %v2064_v20 = vmul.f32 %v2038_v54, %v1909_v46 }
 0x272   : > { %v2071_v41 = vadd.f32 %v2070_v44, %v2062_v21  ;;  %v2046_v14 = vadd.f32 %v2045_v35, %v2037_v30 }
 0x274   : > { %v2047_v38 = vadd.f32 %v2046_v14, %v2038_v54  ;;  %v2072_v23 = vadd.f32 %v2071_v41, %v2063_v26 }
 0x276   : > { %v2073_v4 = vadd.f32 %v2072_v23, %v2064_v20 }
 0x27c   : > { %v1914_v53 = vpop.f32.mrb[4].mxu1 }
 0x27d   : > { %v2039_v2 = vmul.f32 %v2024_v49, %v1914_v53  ;;  %v2462_v31 = vpop.f32.mrb[5].mxu1 }
 0x27e   : > { %v1917_v33 = vpop.f32.mrb[6].mxu1 }
 0x27f   : > { %v2048_v63 = vadd.f32 %v2047_v38, %v2039_v2  ;;  %v2065_v8 = vmul.f32 %v2039_v2, %v1914_v53  ;;  %v2412_v3 = vpack.c.bf16 %v1917_v33, %v1914_v53  ;;  %v2040_v18 = vmul.f32 %v2029_v40, %v1917_v33  ;;  %v2463_v58 = vpop.f32.mrb[7].mxu1 }
 0x281   : > { %v2074_v52 = vadd.f32 %v2073_v4, %v2065_v8  ;;  %2417 = vst [vmem:[%s4159_s19 + $0x20] sm:$0xff] %v2412_v3   ;;  %v2049_v5 = vadd.f32 %v2048_v63, %v2040_v18  ;;  %v2066_v50 = vmul.f32 %v2040_v18, %v1917_v33 }
 0x283   : > { %v2050_v48 = vrot.slane %v2049_v5, 4  ;;  %v2075_v1 = vadd.f32 %v2074_v52, %v2066_v50 }
 0x285   : > { %v2051_v47 = vadd.f32 %v2050_v48, %v2049_v5  ;;  %v2076_v22 = vrot.slane %v2075_v1, 4 }
 0x287   : > { %v2052_v56 = vrot.slane %v2051_v47, 2  ;;  %v2077_v59 = vadd.f32 %v2076_v22, %v2075_v1 }
 0x289   : > { %v2053_v51 = vadd.f32 %v2052_v56, %v2051_v47  ;;  %v2078_v13 = vrot.slane %v2077_v59, 2 }
 0x28b   : > { %v2054_v37 = vrot.slane %v2053_v51, 1  ;;  %v2079_v17 = vadd.f32 %v2078_v13, %v2077_v59 }
 0x28d   : > { %v2055_v0 = vadd.f32 %v2054_v37, %v2053_v51  ;;  %v2080_v32 = vrot.slane %v2079_v17, 1 }
 0x28f   : > { %2056 = vst [vmem:[%s426_s13] sm:$0x1] %v2055_v0  ;;  %v2081_v43 = vadd.f32 %v2080_v32, %v2079_v17 }
 0x291   : > { %2082 = vst [vmem:[%s433_s11] sm:$0x1] %v2081_v43 }
 0x292 PF: > { %s18_s28 = sadd.s32 1, %s2640_s28   ;;  %s4285_s24 = smov %s2632_s26 }
 0x293   : > { %p15_p10 = scmp.ge.s32.totalorder %s18_s28, 10   ;;  %s4286_s25 = smov %s2636_s27 }
 0x294   : > { %s4287_s26 = smov %s4290_s29  ;;  %s4288_s27 = smov %s4294_s30 }
 0x295   :  { %17 = sbr.rel (!%p15_p10) target bundleno = 3 (0x3), region = 100 }

</bundles_post_ra>
